<compile_context>
chip_gen: v5e
topology: v5e:2x2
jax: 0.10.0
libtpu: 0.0.40
codegen_flags: <defaults>
</compile_context>

<pallas_src>
import functools

import jax
import jax.numpy as jnp
from jax import lax
from jax.experimental import pallas as pl
from jax.experimental.pallas import tpu as pltpu


def _round_up(x, m):
    return (x + m - 1) // m * m


def _vmem_capacity_bytes():
    """Physical per-core VMEM; conservative v7x fallback (64 MiB) if the query fails."""
    try:
        info = pltpu.get_tpu_info()
        for name in ("vmem_capacity_bytes", "vmem_bytes", "vmem_size_bytes"):
            cap = getattr(info, name, None)
            if cap:
                return int(cap)
    except Exception:
        pass
    return 64 * 1024 * 1024


def _choose_tiles(B, S, Hp, Lp):
    """Pick (tile_b, tile_s, chunk_s, Bp, Sp, vmem_limit) from a VMEM budget.

    v5e/v6e: 128 MiB VMEM -> large tiles; v7x: 64 MiB/TC -> count the f32 temporaries
    explicitly and keep >= 2 batch tiles when B allows (2 TensorCores, axis 0 parallel).
    """
    cap = _vmem_capacity_bytes()
    vmem_limit = int(min(0.75 * cap, 100 * 1024 * 1024))
    budget = int(0.8 * vmem_limit)

    if B <= 24:
        tile_b = 8        # B<=8: nothing to shard; 8<B<=24: keeps >=2 batch tiles (v7x)
    else:
        tile_b = 16
    Bp = _round_up(B, tile_b)

    def usage(ts, cs):
        emb_blk = tile_b * ts * Hp * 2                       # bf16 activation block
        se_blk = tile_b * ts * 128 * 4                       # lane-1 mask block pads to 128 lanes
        weights = 2 * Hp * Hp * 2 + Hp * Lp * 2 + (2 * Hp + Lp) * 4   # single-buffered bf16 W
        small = tile_b * 128 * 4 + tile_b * Lp * 4 + tile_b * 128 * 4  # labels + outputs
        scratch = tile_b * Hp * 4                            # pooled accumulator
        temps = 3 * tile_b * cs * Hp * 4                     # in-kernel f32 h / h*mask chunk temps
        return 2 * (emb_blk + se_blk + small) + weights + scratch + temps

    if S <= 128:
        tile_s = _round_up(S, 16)       # bf16 packs 16 sublanes per vreg
        chunk_s = tile_s
    else:
        s_cap = _round_up(S, 128)
        tile_s, chunk_s = 128, 128
        for cand in (512, 256, 128):    # biggest tile that fits the budget
            ts = min(cand, s_cap)
            if usage(ts, 128) <= budget:
                tile_s, chunk_s = ts, 128
                break
    Sp = _round_up(S, tile_s)
    return tile_b, tile_s, chunk_s, Bp, Sp, vmem_limit


# ----------------------------------------------------------------------------
# Fused kernel:
#   per (b_tile, s_tile), chunked over s:
#     h      = tanh(emb_chunk @ W_enc + b_enc)                  (stand-in encoder)
#     acc   += sum_s( h * start_end_mask_chunk )                (masked sum-pool)
#   at the last s_tile (epilogue):
#     hidden = acc @ W1 + b1                                    (nn.Linear(H, H))
#     (Dropout(p=0.1) is identity in eval/inference)
#     logits = hidden @ W2 + b2                                 (nn.Linear(H, L))
#     loss_i = logsumexp(logits_i[:L]) - logits_i[label_i]      (per-example CE)
# ----------------------------------------------------------------------------
def mlub_fused_kernel(emb_ref, se_ref, we_ref, be_ref, w1_ref, b1_ref, w2_ref,
                      b2_ref, labels_ref, logits_ref, loss_ref, acc_ref,
                      *, num_labels, chunk_s):
    s_idx = pl.program_id(1)

    @pl.when(s_idx == 0)
    def _():
        acc_ref[...] = jnp.zeros_like(acc_ref)

    tb, ts, hp = emb_ref.shape
    w_enc = we_ref[...]                    # resident bf16 weight (single-buffered)
    b_enc = be_ref[...]

    # Chunk the matmul+tanh+masked-accumulate over the sequence tile so f32 temporaries
    # stay bounded (chunk_s rows) independent of TILE_S (important for v7x's 64 MiB VMEM).
    def chunk_body(c, carry):
        off = pl.multiple_of(c * chunk_s, chunk_s)
        e = emb_ref[:, pl.ds(off, chunk_s), :]                        # (TB, CS, Hp) bf16
        h = jnp.dot(e.reshape(tb * chunk_s, hp), w_enc,
                    preferred_element_type=jnp.float32)               # MXU, f32 acc
        h = jnp.tanh(h + b_enc).reshape(tb, chunk_s, hp)              # f32 (v5e-safe)
        m = se_ref[:, pl.ds(off, chunk_s), :]                         # (TB, CS, 1) f32
        acc_ref[...] += jnp.sum(h * m, axis=1)                        # masked sum-pool
        return carry

    lax.fori_loop(0, ts // chunk_s, chunk_body, 0, unroll=True)

    @pl.when(s_idx == pl.num_programs(1) - 1)
    def _():
        pooled = acc_ref[...].astype(jnp.bfloat16)                    # (TB, Hp)
        hidden = jnp.dot(pooled, w1_ref[...],
                         preferred_element_type=jnp.float32) + b1_ref[...]
        # TODO(synk): nn.Dropout(p=0.1) is identity in eval/inference mode; training
        # parity would need pltpu.prng_seed + pltpu.prng_random_bits masking here.
        logits = jnp.dot(hidden.astype(jnp.bfloat16), w2_ref[...],
                         preferred_element_type=jnp.float32) + b2_ref[...]   # (TB, Lp)
        logits_ref[...] = logits

        # cross entropy on the real label columns only (padded columns -> -inf)
        col = lax.broadcasted_iota(jnp.int32, logits.shape, 1)
        masked = jnp.where(col < num_labels, logits, jnp.float32(-1e30))
        mx = jnp.max(masked, axis=1, keepdims=True)
        lse = mx + jnp.log(jnp.sum(jnp.exp(masked - mx), axis=1, keepdims=True))
        picked = jnp.sum(jnp.where(col == labels_ref[...], logits, 0.0),
                         axis=1, keepdims=True)
        loss_ref[...] = lse - picked                                  # per-example CE


_HAS_BUFFERED = hasattr(pl, "Buffered")


def _const_spec(shape, single_buffer):
    """BlockSpec for a grid-invariant operand; single-buffered when supported."""
    idx = lambda b, s: (0,) * len(shape)
    if single_buffer and _HAS_BUFFERED:
        try:
            return pl.BlockSpec(shape, idx, pipeline_mode=pl.Buffered(1))
        except TypeError:     # BlockSpec without pipeline_mode kwarg
            pass
    return pl.BlockSpec(shape, idx)


def _build_call(num_labels, chunk_s, Bp, Sp, Hp, Lp, tile_b, tile_s, vmem_limit,
                single_buffer_consts):
    nb, ns = Bp // tile_b, Sp // tile_s
    kernel = functools.partial(mlub_fused_kernel, num_labels=num_labels,
                               chunk_s=chunk_s)
    grid_spec = pltpu.PrefetchScalarGridSpec(
        num_scalar_prefetch=0,
        grid=(nb, ns),
        in_specs=[
            pl.BlockSpec((tile_b, tile_s, Hp), lambda b, s: (b, s, 0)),   # emb (bf16)
            pl.BlockSpec((tile_b, tile_s, 1), lambda b, s: (b, s, 0)),    # start/end mask (f32)
            _const_spec((Hp, Hp), single_buffer_consts),                  # W_enc (bf16, resident)
            _const_spec((1, Hp), single_buffer_consts),                   # b_enc
            _const_spec((Hp, Hp), single_buffer_consts),                  # W1 (bf16, resident)
            _const_spec((1, Hp), single_buffer_consts),                   # b1
            _const_spec((Hp, Lp), single_buffer_consts),                  # W2 (bf16, resident)
            _const_spec((1, Lp), single_buffer_consts),                   # b2
            pl.BlockSpec((tile_b, 1), lambda b, s: (b, 0)),               # labels
        ],
        out_specs=(
            pl.BlockSpec((tile_b, Lp), lambda b, s: (b, 0)),              # logits (lane-dense)
            pl.BlockSpec((tile_b, 1), lambda b, s: (b, 0)),               # per-example CE
        ),
        scratch_shapes=[pltpu.VMEM((tile_b, Hp), jnp.float32)],           # pooled accumulator
    )
    return pl.pallas_call(
        kernel,
        out_shape=(jax.ShapeDtypeStruct((Bp, Lp), jnp.float32),
                   jax.ShapeDtypeStruct((Bp, 1), jnp.float32)),
        grid_spec=grid_spec,
        compiler_params=pltpu.CompilerParams(
            dimension_semantics=("parallel", "arbitrary"),   # batch || , seq = reduction
            vmem_limit_bytes=vmem_limit,
        ),
    )


# ----------------------------------------------------------------------------
# Full forward (glue in plain JAX: embedding gather fused with attention-mask zeroing)
# ----------------------------------------------------------------------------
def mlub_forward(params, input_ids, attention_mask, start_end_mask, labels):
    # TODO(synk): the HF AutoModel backbone (multi-layer self-attention encoder) has no
    # checkpoint to load; it is replaced by a deterministic embedding + dense+tanh
    # stand-in.  The MLUB head semantics (mask multiply, sum over seq,
    # Linear->Dropout(eval)->Linear, CrossEntropyLoss mean) are preserved.
    B, S = input_ids.shape
    V, H = params["emb"].shape
    L = params["w2"].shape[1]
    # NOTE: 256-multiples fill the 256x256 MXU on v6e/v7x; typical H (768/1024) already
    # are, and 128 is optimal on v5e, so 128 alignment is used unconditionally.
    Hp = _round_up(H, 128)
    Lp = _round_up(L, 128)
    tile_b, tile_s, chunk_s, Bp, Sp, vmem_limit = _choose_tiles(B, S, Hp, Lp)

    # Pad only the small 2-D operands; the big (B,S,H) activation is produced already
    # padded + bf16 by the embedding gather itself (no extra padded-copy pass over the
    # largest tensor in HBM), with the attention-mask zeroing fused into the gather.
    ids_p = jnp.zeros((Bp, Sp), jnp.int32).at[:B, :S].set(input_ids.astype(jnp.int32))
    attn_p = jnp.zeros((Bp, Sp), jnp.bfloat16).at[:B, :S].set(
        attention_mask.astype(jnp.bfloat16))
    se_p = jnp.zeros((Bp, Sp, 1), jnp.float32).at[:B, :S, 0].set(
        start_end_mask.astype(jnp.float32))
    lbl_p = jnp.zeros((Bp, 1), jnp.int32).at[:B, 0].set(labels.astype(jnp.int32))

    # embedding table is stored bf16; pad the feature axis once (V x Hp, not B x S x Hp)
    emb_tab = jnp.zeros((V, Hp), jnp.bfloat16).at[:, :H].set(params["emb"])
    # TODO(synk): the gather itself could be fused into the kernel via a scalar-prefetched
    # pl.Element row gather to avoid materializing emb (B,S,Hp) in HBM at all.
    emb = emb_tab[ids_p] * attn_p[:, :, None]                        # (Bp, Sp, Hp) bf16

    # weights: bf16 operands (f32 MXU accumulation), biases f32
    we_p = jnp.zeros((Hp, Hp), jnp.bfloat16).at[:H, :H].set(
        params["w_enc"].astype(jnp.bfloat16))
    be_p = jnp.zeros((1, Hp), jnp.float32).at[:, :H].set(params["b_enc"])
    w1_p = jnp.zeros((Hp, Hp), jnp.bfloat16).at[:H, :H].set(
        params["w1"].astype(jnp.bfloat16))
    b1_p = jnp.zeros((1, Hp), jnp.float32).at[:, :H].set(params["b1"])
    w2_p = jnp.zeros((Hp, Lp), jnp.bfloat16).at[:H, :L].set(
        params["w2"].astype(jnp.bfloat16))
    b2_p = jnp.zeros((1, Lp), jnp.float32).at[:, :L].set(params["b2"])

    args = (emb, se_p, we_p, be_p, w1_p, b1_p, w2_p, b2_p, lbl_p)
    try:
        call = _build_call(L, chunk_s, Bp, Sp, Hp, Lp, tile_b, tile_s, vmem_limit,
                           single_buffer_consts=True)
        logits_p, loss_p = call(*args)
    except Exception:
        # single-buffered resident weights (pl.Buffered(1)) unsupported -> default buffering
        call = _build_call(L, chunk_s, Bp, Sp, Hp, Lp, tile_b, tile_s, vmem_limit,
                           single_buffer_consts=False)
        logits_p, loss_p = call(*args)

    logits = logits_p[:B, :L]
    loss = jnp.mean(loss_p[:B, 0])      # CrossEntropyLoss mean reduction over batch
    return logits, loss


# pure-JAX reference (mirrors the kernel's bf16 operand choices) for validation
def mlub_reference(params, input_ids, attention_mask, start_end_mask, labels):
    emb = params["emb"][input_ids] * attention_mask[:, :, None].astype(jnp.bfloat16)
    h = jnp.tanh(jnp.dot(emb, params["w_enc"].astype(jnp.bfloat16),
                         preferred_element_type=jnp.float32) + params["b_enc"])
    pooled = jnp.sum(h * start_end_mask[:, :, None].astype(jnp.float32), axis=1)
    hidden = jnp.dot(pooled.astype(jnp.bfloat16), params["w1"].astype(jnp.bfloat16),
                     preferred_element_type=jnp.float32) + params["b1"]
    logits = jnp.dot(hidden.astype(jnp.bfloat16), params["w2"].astype(jnp.bfloat16),
                     preferred_element_type=jnp.float32) + params["b2"]
    lse = jax.scipy.special.logsumexp(logits, axis=1)
    picked = jnp.take_along_axis(logits, labels[:, None].astype(jnp.int32), axis=1)[:, 0]
    return logits, jnp.mean(lse - picked)


def init_params(key, vocab, hidden, num_labels):
    ks = jax.random.split(key, 4)
    scale = 0.02
    return {
        # embedding table stored in bf16 so the gather streams bf16 (halves HBM traffic)
        "emb":   (scale * jax.random.normal(ks[0], (vocab, hidden), jnp.float32)
                  ).astype(jnp.bfloat16),
        "w_enc": scale * jax.random.normal(ks[1], (hidden, hidden), jnp.float32),
        "b_enc": jnp.zeros((1, hidden), jnp.float32),
        "w1":    scale * jax.random.normal(ks[2], (hidden, hidden), jnp.float32),
        "b1":    jnp.zeros((1, hidden), jnp.float32),
        "w2":    scale * jax.random.normal(ks[3], (hidden, num_labels), jnp.float32),
        "b2":    jnp.zeros((1, num_labels), jnp.float32),
    }


if __name__ == "__main__":
    B, S, H, L, V = 2, 8, 32, 4, 64

    key = jax.random.PRNGKey(0)
    k_par, k_ids, k_mask, k_lbl = jax.random.split(key, 4)

    params = init_params(k_par, vocab=V, hidden=H, num_labels=L)

    input_ids = jax.random.randint(k_ids, (B, S), 0, V, dtype=jnp.int32)
    attention_mask = jnp.ones((B, S), dtype=jnp.int32)
    start_end_mask = (jax.random.uniform(k_mask, (B, S)) < 0.3).astype(jnp.float32)
    labels = jax.random.randint(k_lbl, (B,), 0, L, dtype=jnp.int32)

    logits, loss = mlub_forward(params, input_ids, attention_mask,
                                start_end_mask, labels)
    jax.block_until_ready((logits, loss))

    ref_logits, ref_loss = mlub_reference(params, input_ids, attention_mask,
                                          start_end_mask, labels)

    assert logits.shape == (B, L)
    assert jnp.isfinite(loss)
    assert jnp.allclose(logits, ref_logits, atol=2e-3, rtol=2e-2)
    assert jnp.allclose(loss, ref_loss, atol=2e-3, rtol=2e-2)
    print("KERNEL_OK")
</pallas_src>

<mosaic_0001>
module attributes {stable_mosaic.version = 11 : i64} {
  func.func @mlub_fused_kernel(%arg0: i32, %arg1: i32, %arg2: memref<8x16x128xbf16, #tpu.memory_space<vmem>>, %arg3: memref<8x16x1xf32, #tpu.memory_space<vmem>>, %arg4: memref<128x128xbf16, #tpu.memory_space<vmem>>, %arg5: memref<1x128xf32, #tpu.memory_space<vmem>>, %arg6: memref<128x128xbf16, #tpu.memory_space<vmem>>, %arg7: memref<1x128xf32, #tpu.memory_space<vmem>>, %arg8: memref<128x128xbf16, #tpu.memory_space<vmem>>, %arg9: memref<1x128xf32, #tpu.memory_space<vmem>>, %arg10: memref<8x1xi32, #tpu.memory_space<vmem>>, %arg11: memref<8x128xf32, #tpu.memory_space<vmem>>, %arg12: memref<8x1xf32, #tpu.memory_space<vmem>>, %arg13: memref<8x128xf32, #tpu.memory_space<vmem>>) attributes {dimension_semantics = [#tpu.dimension_semantics<parallel>, #tpu.dimension_semantics<arbitrary>], iteration_bounds = array<i64: 1, 1>, scalar_prefetch = 0 : i64, scratch_operands = 1 : i64, tpu.core_type = #tpu.core_type<tc>, window_params = [{transform_indices = @transform_0, window_bounds = array<i64: 8, 16, 128>}, {transform_indices = @transform_1, window_bounds = array<i64: 8, 16, 1>}, {pipeline_mode = #tpu.pipeline_mode<synchronous>, transform_indices = @transform_2, window_bounds = array<i64: 128, 128>}, {pipeline_mode = #tpu.pipeline_mode<synchronous>, transform_indices = @transform_3, window_bounds = array<i64: 1, 128>}, {pipeline_mode = #tpu.pipeline_mode<synchronous>, transform_indices = @transform_4, window_bounds = array<i64: 128, 128>}, {pipeline_mode = #tpu.pipeline_mode<synchronous>, transform_indices = @transform_5, window_bounds = array<i64: 1, 128>}, {pipeline_mode = #tpu.pipeline_mode<synchronous>, transform_indices = @transform_6, window_bounds = array<i64: 128, 128>}, {pipeline_mode = #tpu.pipeline_mode<synchronous>, transform_indices = @transform_7, window_bounds = array<i64: 1, 128>}, {transform_indices = @transform_8, window_bounds = array<i64: 8, 1>}, {transform_indices = @transform_9, window_bounds = array<i64: 8, 128>}, {transform_indices = @transform_10, window_bounds = array<i64: 8, 1>}]} {
    %c0_i32 = arith.constant 0 : i32
    %0 = arith.cmpi eq, %arg1, %c0_i32 : i32
    %1 = arith.extui %0 : i1 to i32
    %c0_i32_0 = arith.constant 0 : i32
    %2 = arith.cmpi ne, %1, %c0_i32_0 : i32
    scf.if %2 {
      %cst_16 = arith.constant 0.000000e+00 : f32
      %26 = vector.broadcast %cst_16 : f32 to vector<8x128xf32>
      %c0_17 = arith.constant 0 : index
      %c0_18 = arith.constant 0 : index
      %27 = vector.load %arg13[%c0_17, %c0_18] : memref<8x128xf32, #tpu.memory_space<vmem>>, vector<8x128xf32>
      tpu.vector_store %arg13[%c0_17, %c0_18], %26 {strides = array<i32>} : memref<8x128xf32, #tpu.memory_space<vmem>>, vector<8x128xf32>,
    } else {
    }
    %c0 = arith.constant 0 : index
    %c0_1 = arith.constant 0 : index
    %3 = vector.load %arg4[%c0, %c0_1] : memref<128x128xbf16, #tpu.memory_space<vmem>>, vector<128x128xbf16>
    %c0_2 = arith.constant 0 : index
    %c0_3 = arith.constant 0 : index
    %4 = vector.load %arg5[%c0_2, %c0_3] : memref<1x128xf32, #tpu.memory_space<vmem>>, vector<1x128xf32>
    %c0_i32_4 = arith.constant 0 : i32
    %c16_i32 = arith.constant 16 : i32
    %5 = arith.muli %c0_i32_4, %c16_i32 : i32
    %6 = tpu.assume_multiple %5, 16 : i32
    %c0_5 = arith.constant 0 : index
    %7 = arith.index_cast %6 : i32 to index
    %c0_6 = arith.constant 0 : index
    %8 = vector.load %arg2[%c0_5, %7, %c0_6] : memref<8x16x128xbf16, #tpu.memory_space<vmem>>, vector<8x16x128xbf16>
    %9 = vector.shape_cast %8 : vector<8x16x128xbf16> to vector<128x128xbf16>
    %cst = arith.constant dense<0.000000e+00> : vector<128x128xf32>
    %10 = tpu.matmul %9, %3, %cst {dimension_numbers = #tpu.dot_dimension_numbers<[1], [0], [0], [1], [0, 0, 1, 1], [], []>} : vector<128x128xbf16>, vector<128x128xbf16>, vector<128x128xf32> -> vector<128x128xf32>
    %11 = vector.broadcast %4 : vector<1x128xf32> to vector<128x128xf32>
    %12 = arith.addf %10, %11 : vector<128x128xf32>
    %13 = math.tanh %12 : vector<128x128xf32>
    %14 = vector.shape_cast %13 : vector<128x128xf32> to vector<8x16x128xf32>
    %c0_7 = arith.constant 0 : index
    %15 = arith.index_cast %6 : i32 to index
    %c0_8 = arith.constant 0 : index
    %16 = vector.load %arg3[%c0_7, %15, %c0_8] : memref<8x16x1xf32, #tpu.memory_space<vmem>>, vector<8x16x1xf32>
    %c0_9 = arith.constant 0 : index
    %c0_10 = arith.constant 0 : index
    %17 = vector.load %arg13[%c0_9, %c0_10] : memref<8x128xf32, #tpu.memory_space<vmem>>, vector<8x128xf32>
    %18 = vector.broadcast %16 : vector<8x16x1xf32> to vector<8x16x128xf32>
    %19 = arith.mulf %14, %18 : vector<8x16x128xf32>
    %cst_11 = arith.constant dense<0.000000e+00> : vector<8x128xf32>
    %20 = vector.multi_reduction <add>, %19, %cst_11 [1] : vector<8x16x128xf32> to vector<8x128xf32>
    %21 = arith.addf %17, %20 : vector<8x128xf32>
    %c0_12 = arith.constant 0 : index
    %c0_13 = arith.constant 0 : index
    %22 = vector.load %arg13[%c0_12, %c0_13] : memref<8x128xf32, #tpu.memory_space<vmem>>, vector<8x128xf32>
    tpu.vector_store %arg13[%c0_12, %c0_13], %21 {strides = array<i32>} : memref<8x128xf32, #tpu.memory_space<vmem>>, vector<8x128xf32>,
    %c1_i32 = arith.constant 1 : i32
    %c0_i32_14 = arith.constant 0 : i32
    %23 = arith.cmpi eq, %arg1, %c0_i32_14 : i32
    %24 = arith.extui %23 : i1 to i32
    %c0_i32_15 = arith.constant 0 : i32
    %25 = arith.cmpi ne, %24, %c0_i32_15 : i32
    scf.if %25 {
      %c0_16 = arith.constant 0 : index
      %c0_17 = arith.constant 0 : index
      %26 = vector.load %arg13[%c0_16, %c0_17] : memref<8x128xf32, #tpu.memory_space<vmem>>, vector<8x128xf32>
      %27 = arith.truncf %26 : vector<8x128xf32> to vector<8x128xbf16>
      %c0_18 = arith.constant 0 : index
      %c0_19 = arith.constant 0 : index
      %28 = vector.load %arg6[%c0_18, %c0_19] : memref<128x128xbf16, #tpu.memory_space<vmem>>, vector<128x128xbf16>
      %cst_20 = arith.constant dense<0.000000e+00> : vector<8x128xf32>
      %29 = tpu.matmul %27, %28, %cst_20 {dimension_numbers = #tpu.dot_dimension_numbers<[1], [0], [0], [1], [0, 0, 1, 1], [], []>} : vector<8x128xbf16>, vector<128x128xbf16>, vector<8x128xf32> -> vector<8x128xf32>
      %c0_21 = arith.constant 0 : index
      %c0_22 = arith.constant 0 : index
      %30 = vector.load %arg7[%c0_21, %c0_22] : memref<1x128xf32, #tpu.memory_space<vmem>>, vector<1x128xf32>
      %31 = vector.broadcast %30 : vector<1x128xf32> to vector<8x128xf32>
      %32 = arith.addf %29, %31 : vector<8x128xf32>
      %33 = arith.truncf %32 : vector<8x128xf32> to vector<8x128xbf16>
      %c0_23 = arith.constant 0 : index
      %c0_24 = arith.constant 0 : index
      %34 = vector.load %arg8[%c0_23, %c0_24] : memref<128x128xbf16, #tpu.memory_space<vmem>>, vector<128x128xbf16>
      %cst_25 = arith.constant dense<0.000000e+00> : vector<8x128xf32>
      %35 = tpu.matmul %33, %34, %cst_25 {dimension_numbers = #tpu.dot_dimension_numbers<[1], [0], [0], [1], [0, 0, 1, 1], [], []>} : vector<8x128xbf16>, vector<128x128xbf16>, vector<8x128xf32> -> vector<8x128xf32>
      %c0_26 = arith.constant 0 : index
      %c0_27 = arith.constant 0 : index
      %36 = vector.load %arg9[%c0_26, %c0_27] : memref<1x128xf32, #tpu.memory_space<vmem>>, vector<1x128xf32>
      %37 = vector.broadcast %36 : vector<1x128xf32> to vector<8x128xf32>
      %38 = arith.addf %35, %37 : vector<8x128xf32>
      %c0_28 = arith.constant 0 : index
      %c0_29 = arith.constant 0 : index
      %39 = vector.load %arg11[%c0_28, %c0_29] : memref<8x128xf32, #tpu.memory_space<vmem>>, vector<8x128xf32>
      tpu.vector_store %arg11[%c0_28, %c0_29], %38 {strides = array<i32>} : memref<8x128xf32, #tpu.memory_space<vmem>>, vector<8x128xf32>,
      %40 = tpu.iota {dimensions = array<i32: 1>} : vector<8x128xi32>
      %c4_i32 = arith.constant 4 : i32
      %41 = vector.broadcast %c4_i32 : i32 to vector<8x128xi32>
      %42 = arith.cmpi slt, %40, %41 : vector<8x128xi32>
      %cst_30 = arith.constant -1.000000e+30 : f32
      %43 = vector.broadcast %cst_30 : f32 to vector<8x128xf32>
      %44 = arith.select %42, %38, %43 : vector<8x128xi1>, vector<8x128xf32>
      %cst_31 = arith.constant dense<0xFF800000> : vector<8xf32>
      %45 = vector.multi_reduction <maximumf>, %44, %cst_31 [1] : vector<8x128xf32> to vector<8xf32>
      %46 = vector.shape_cast %45 : vector<8xf32> to vector<8x1xf32>
      %47 = vector.broadcast %46 : vector<8x1xf32> to vector<8x128xf32>
      %48 = arith.subf %44, %47 : vector<8x128xf32>
      %49 = math.exp %48 : vector<8x128xf32>
      %cst_32 = arith.constant dense<0.000000e+00> : vector<8xf32>
      %50 = vector.multi_reduction <add>, %49, %cst_32 [1] : vector<8x128xf32> to vector<8xf32>
      %51 = vector.shape_cast %50 : vector<8xf32> to vector<8x1xf32>
      %52 = math.log %51 : vector<8x1xf32>
      %53 = arith.addf %46, %52 : vector<8x1xf32>
      %c0_33 = arith.constant 0 : index
      %c0_34 = arith.constant 0 : index
      %54 = vector.load %arg10[%c0_33, %c0_34] : memref<8x1xi32, #tpu.memory_space<vmem>>, vector<8x1xi32>
      %55 = vector.broadcast %54 : vector<8x1xi32> to vector<8x128xi32>
      %56 = arith.cmpi eq, %40, %55 : vector<8x128xi32>
      %cst_35 = arith.constant 0.000000e+00 : f32
      %57 = vector.broadcast %cst_35 : f32 to vector<8x128xf32>
      %58 = arith.select %56, %38, %57 : vector<8x128xi1>, vector<8x128xf32>
      %cst_36 = arith.constant dense<0.000000e+00> : vector<8xf32>
      %59 = vector.multi_reduction <add>, %58, %cst_36 [1] : vector<8x128xf32> to vector<8xf32>
      %60 = vector.shape_cast %59 : vector<8xf32> to vector<8x1xf32>
      %61 = arith.subf %53, %60 : vector<8x1xf32>
      %c0_37 = arith.constant 0 : index
      %c0_38 = arith.constant 0 : index
      %62 = vector.load %arg12[%c0_37, %c0_38] : memref<8x1xf32, #tpu.memory_space<vmem>>, vector<8x1xf32>
      tpu.vector_store %arg12[%c0_37, %c0_38], %61 {strides = array<i32>} : memref<8x1xf32, #tpu.memory_space<vmem>>, vector<8x1xf32>,
    } else {
    }
    return
  }
  func.func @transform_0(%arg0: i32, %arg1: i32) -> (i32, i32, i32) {
    %c0_i32 = arith.constant 0 : i32
    %c0_i32_0 = arith.constant 0 : i32
    return %arg0, %arg1, %c0_i32 : i32, i32, i32
  }
  func.func @transform_1(%arg0: i32, %arg1: i32) -> (i32, i32, i32) {
    %c0_i32 = arith.constant 0 : i32
    %c0_i32_0 = arith.constant 0 : i32
    return %arg0, %arg1, %c0_i32 : i32, i32, i32
  }
  func.func @transform_2(%arg0: i32, %arg1: i32) -> (i32, i32) {
    %c0_i32 = arith.constant 0 : i32
    %c0_i32_0 = arith.constant 0 : i32
    %c0_i32_1 = arith.constant 0 : i32
    return %c0_i32, %c0_i32_0 : i32, i32
  }
  func.func @transform_3(%arg0: i32, %arg1: i32) -> (i32, i32) {
    %c0_i32 = arith.constant 0 : i32
    %c0_i32_0 = arith.constant 0 : i32
    %c0_i32_1 = arith.constant 0 : i32
    return %c0_i32, %c0_i32_0 : i32, i32
  }
  func.func @transform_4(%arg0: i32, %arg1: i32) -> (i32, i32) {
    %c0_i32 = arith.constant 0 : i32
    %c0_i32_0 = arith.constant 0 : i32
    %c0_i32_1 = arith.constant 0 : i32
    return %c0_i32, %c0_i32_0 : i32, i32
  }
  func.func @transform_5(%arg0: i32, %arg1: i32) -> (i32, i32) {
    %c0_i32 = arith.constant 0 : i32
    %c0_i32_0 = arith.constant 0 : i32
    %c0_i32_1 = arith.constant 0 : i32
    return %c0_i32, %c0_i32_0 : i32, i32
  }
  func.func @transform_6(%arg0: i32, %arg1: i32) -> (i32, i32) {
    %c0_i32 = arith.constant 0 : i32
    %c0_i32_0 = arith.constant 0 : i32
    %c0_i32_1 = arith.constant 0 : i32
    return %c0_i32, %c0_i32_0 : i32, i32
  }
  func.func @transform_7(%arg0: i32, %arg1: i32) -> (i32, i32) {
    %c0_i32 = arith.constant 0 : i32
    %c0_i32_0 = arith.constant 0 : i32
    %c0_i32_1 = arith.constant 0 : i32
    return %c0_i32, %c0_i32_0 : i32, i32
  }
  func.func @transform_8(%arg0: i32, %arg1: i32) -> (i32, i32) {
    %c0_i32 = arith.constant 0 : i32
    %c0_i32_0 = arith.constant 0 : i32
    return %arg0, %c0_i32 : i32, i32
  }
  func.func @transform_9(%arg0: i32, %arg1: i32) -> (i32, i32) {
    %c0_i32 = arith.constant 0 : i32
    %c0_i32_0 = arith.constant 0 : i32
    return %arg0, %c0_i32 : i32, i32
  }
  func.func @transform_10(%arg0: i32, %arg1: i32) -> (i32, i32) {
    %c0_i32 = arith.constant 0 : i32
    %c0_i32_0 = arith.constant 0 : i32
    return %arg0, %c0_i32 : i32, i32
  }
}

module attributes {stable_mosaic.version = 11 : i64} {
  func.func @mlub_fused_kernel(%arg0: i32, %arg1: i32, %arg2: memref<8x16x128xbf16, #tpu.memory_space<vmem>>, %arg3: memref<8x16x1xf32, #tpu.memory_space<vmem>>, %arg4: memref<128x128xbf16, #tpu.memory_space<vmem>>, %arg5: memref<1x128xf32, #tpu.memory_space<vmem>>, %arg6: memref<128x128xbf16, #tpu.memory_space<vmem>>, %arg7: memref<1x128xf32, #tpu.memory_space<vmem>>, %arg8: memref<128x128xbf16, #tpu.memory_space<vmem>>, %arg9: memref<1x128xf32, #tpu.memory_space<vmem>>, %arg10: memref<8x1xi32, #tpu.memory_space<vmem>>, %arg11: memref<8x128xf32, #tpu.memory_space<vmem>>, %arg12: memref<8x1xf32, #tpu.memory_space<vmem>>, %arg13: memref<8x128xf32, #tpu.memory_space<vmem>>) attributes {dimension_semantics = [#tpu.dimension_semantics<parallel>, #tpu.dimension_semantics<arbitrary>], iteration_bounds = array<i64: 1, 1>, scalar_prefetch = 0 : i64, scratch_operands = 1 : i64, tpu.core_type = #tpu.core_type<tc>, window_params = [{transform_indices = @transform_0, window_bounds = array<i64: 8, 16, 128>}, {transform_indices = @transform_1, window_bounds = array<i64: 8, 16, 1>}, {pipeline_mode = #tpu.pipeline_mode<synchronous>, transform_indices = @transform_2, window_bounds = array<i64: 128, 128>}, {pipeline_mode = #tpu.pipeline_mode<synchronous>, transform_indices = @transform_3, window_bounds = array<i64: 1, 128>}, {pipeline_mode = #tpu.pipeline_mode<synchronous>, transform_indices = @transform_4, window_bounds = array<i64: 128, 128>}, {pipeline_mode = #tpu.pipeline_mode<synchronous>, transform_indices = @transform_5, window_bounds = array<i64: 1, 128>}, {pipeline_mode = #tpu.pipeline_mode<synchronous>, transform_indices = @transform_6, window_bounds = array<i64: 128, 128>}, {pipeline_mode = #tpu.pipeline_mode<synchronous>, transform_indices = @transform_7, window_bounds = array<i64: 1, 128>}, {transform_indices = @transform_8, window_bounds = array<i64: 8, 1>}, {transform_indices = @transform_9, window_bounds = array<i64: 8, 128>}, {transform_indices = @transform_10, window_bounds = array<i64: 8, 1>}]} {
    %c0_i32 = arith.constant 0 : i32
    %0 = arith.cmpi eq, %arg1, %c0_i32 : i32
    %1 = arith.extui %0 : i1 to i32
    %c0_i32_0 = arith.constant 0 : i32
    %2 = arith.cmpi ne, %1, %c0_i32_0 : i32
    scf.if %2 {
      %cst_16 = arith.constant 0.000000e+00 : f32
      %26 = vector.broadcast %cst_16 : f32 to vector<8x128xf32>
      %c0_17 = arith.constant 0 : index
      %c0_18 = arith.constant 0 : index
      %27 = vector.load %arg13[%c0_17, %c0_18] : memref<8x128xf32, #tpu.memory_space<vmem>>, vector<8x128xf32>
      tpu.vector_store %arg13[%c0_17, %c0_18], %26 {strides = array<i32>} : memref<8x128xf32, #tpu.memory_space<vmem>>, vector<8x128xf32>,
    } else {
    }
    %c0 = arith.constant 0 : index
    %c0_1 = arith.constant 0 : index
    %3 = vector.load %arg4[%c0, %c0_1] : memref<128x128xbf16, #tpu.memory_space<vmem>>, vector<128x128xbf16>
    %c0_2 = arith.constant 0 : index
    %c0_3 = arith.constant 0 : index
    %4 = vector.load %arg5[%c0_2, %c0_3] : memref<1x128xf32, #tpu.memory_space<vmem>>, vector<1x128xf32>
    %c0_i32_4 = arith.constant 0 : i32
    %c16_i32 = arith.constant 16 : i32
    %5 = arith.muli %c0_i32_4, %c16_i32 : i32
    %6 = tpu.assume_multiple %5, 16 : i32
    %c0_5 = arith.constant 0 : index
    %7 = arith.index_cast %6 : i32 to index
    %c0_6 = arith.constant 0 : index
    %8 = vector.load %arg2[%c0_5, %7, %c0_6] : memref<8x16x128xbf16, #tpu.memory_space<vmem>>, vector<8x16x128xbf16>
    %9 = vector.shape_cast %8 : vector<8x16x128xbf16> to vector<128x128xbf16>
    %cst = arith.constant dense<0.000000e+00> : vector<128x128xf32>
    %10 = tpu.matmul %9, %3, %cst {dimension_numbers = #tpu.dot_dimension_numbers<[1], [0], [0], [1], [0, 0, 1, 1], [], []>} : vector<128x128xbf16>, vector<128x128xbf16>, vector<128x128xf32> -> vector<128x128xf32>
    %11 = vector.broadcast %4 : vector<1x128xf32> to vector<128x128xf32>
    %12 = arith.addf %10, %11 : vector<128x128xf32>
    %13 = math.tanh %12 : vector<128x128xf32>
    %14 = vector.shape_cast %13 : vector<128x128xf32> to vector<8x16x128xf32>
    %c0_7 = arith.constant 0 : index
    %15 = arith.index_cast %6 : i32 to index
    %c0_8 = arith.constant 0 : index
    %16 = vector.load %arg3[%c0_7, %15, %c0_8] : memref<8x16x1xf32, #tpu.memory_space<vmem>>, vector<8x16x1xf32>
    %c0_9 = arith.constant 0 : index
    %c0_10 = arith.constant 0 : index
    %17 = vector.load %arg13[%c0_9, %c0_10] : memref<8x128xf32, #tpu.memory_space<vmem>>, vector<8x128xf32>
    %18 = vector.broadcast %16 : vector<8x16x1xf32> to vector<8x16x128xf32>
    %19 = arith.mulf %14, %18 : vector<8x16x128xf32>
    %cst_11 = arith.constant dense<0.000000e+00> : vector<8x128xf32>
    %20 = vector.multi_reduction <add>, %19, %cst_11 [1] : vector<8x16x128xf32> to vector<8x128xf32>
    %21 = arith.addf %17, %20 : vector<8x128xf32>
    %c0_12 = arith.constant 0 : index
    %c0_13 = arith.constant 0 : index
    %22 = vector.load %arg13[%c0_12, %c0_13] : memref<8x128xf32, #tpu.memory_space<vmem>>, vector<8x128xf32>
    tpu.vector_store %arg13[%c0_12, %c0_13], %21 {strides = array<i32>} : memref<8x128xf32, #tpu.memory_space<vmem>>, vector<8x128xf32>,
    %c1_i32 = arith.constant 1 : i32
    %c0_i32_14 = arith.constant 0 : i32
    %23 = arith.cmpi eq, %arg1, %c0_i32_14 : i32
    %24 = arith.extui %23 : i1 to i32
    %c0_i32_15 = arith.constant 0 : i32
    %25 = arith.cmpi ne, %24, %c0_i32_15 : i32
    scf.if %25 {
      %c0_16 = arith.constant 0 : index
      %c0_17 = arith.constant 0 : index
      %26 = vector.load %arg13[%c0_16, %c0_17] : memref<8x128xf32, #tpu.memory_space<vmem>>, vector<8x128xf32>
      %27 = arith.truncf %26 : vector<8x128xf32> to vector<8x128xbf16>
      %c0_18 = arith.constant 0 : index
      %c0_19 = arith.constant 0 : index
      %28 = vector.load %arg6[%c0_18, %c0_19] : memref<128x128xbf16, #tpu.memory_space<vmem>>, vector<128x128xbf16>
      %cst_20 = arith.constant dense<0.000000e+00> : vector<8x128xf32>
      %29 = tpu.matmul %27, %28, %cst_20 {dimension_numbers = #tpu.dot_dimension_numbers<[1], [0], [0], [1], [0, 0, 1, 1], [], []>} : vector<8x128xbf16>, vector<128x128xbf16>, vector<8x128xf32> -> vector<8x128xf32>
      %c0_21 = arith.constant 0 : index
      %c0_22 = arith.constant 0 : index
      %30 = vector.load %arg7[%c0_21, %c0_22] : memref<1x128xf32, #tpu.memory_space<vmem>>, vector<1x128xf32>
      %31 = vector.broadcast %30 : vector<1x128xf32> to vector<8x128xf32>
      %32 = arith.addf %29, %31 : vector<8x128xf32>
      %33 = arith.truncf %32 : vector<8x128xf32> to vector<8x128xbf16>
      %c0_23 = arith.constant 0 : index
      %c0_24 = arith.constant 0 : index
      %34 = vector.load %arg8[%c0_23, %c0_24] : memref<128x128xbf16, #tpu.memory_space<vmem>>, vector<128x128xbf16>
      %cst_25 = arith.constant dense<0.000000e+00> : vector<8x128xf32>
      %35 = tpu.matmul %33, %34, %cst_25 {dimension_numbers = #tpu.dot_dimension_numbers<[1], [0], [0], [1], [0, 0, 1, 1], [], []>} : vector<8x128xbf16>, vector<128x128xbf16>, vector<8x128xf32> -> vector<8x128xf32>
      %c0_26 = arith.constant 0 : index
      %c0_27 = arith.constant 0 : index
      %36 = vector.load %arg9[%c0_26, %c0_27] : memref<1x128xf32, #tpu.memory_space<vmem>>, vector<1x128xf32>
      %37 = vector.broadcast %36 : vector<1x128xf32> to vector<8x128xf32>
      %38 = arith.addf %35, %37 : vector<8x128xf32>
      %c0_28 = arith.constant 0 : index
      %c0_29 = arith.constant 0 : index
      %39 = vector.load %arg11[%c0_28, %c0_29] : memref<8x128xf32, #tpu.memory_space<vmem>>, vector<8x128xf32>
      tpu.vector_store %arg11[%c0_28, %c0_29], %38 {strides = array<i32>} : memref<8x128xf32, #tpu.memory_space<vmem>>, vector<8x128xf32>,
      %40 = tpu.iota {dimensions = array<i32: 1>} : vector<8x128xi32>
      %c4_i32 = arith.constant 4 : i32
      %41 = vector.broadcast %c4_i32 : i32 to vector<8x128xi32>
      %42 = arith.cmpi slt, %40, %41 : vector<8x128xi32>
      %cst_30 = arith.constant -1.000000e+30 : f32
      %43 = vector.broadcast %cst_30 : f32 to vector<8x128xf32>
      %44 = arith.select %42, %38, %43 : vector<8x128xi1>, vector<8x128xf32>
      %cst_31 = arith.constant dense<0xFF800000> : vector<8xf32>
      %45 = vector.multi_reduction <maximumf>, %44, %cst_31 [1] : vector<8x128xf32> to vector<8xf32>
      %46 = vector.shape_cast %45 : vector<8xf32> to vector<8x1xf32>
      %47 = vector.broadcast %46 : vector<8x1xf32> to vector<8x128xf32>
      %48 = arith.subf %44, %47 : vector<8x128xf32>
      %49 = math.exp %48 : vector<8x128xf32>
      %cst_32 = arith.constant dense<0.000000e+00> : vector<8xf32>
      %50 = vector.multi_reduction <add>, %49, %cst_32 [1] : vector<8x128xf32> to vector<8xf32>
      %51 = vector.shape_cast %50 : vector<8xf32> to vector<8x1xf32>
      %52 = math.log %51 : vector<8x1xf32>
      %53 = arith.addf %46, %52 : vector<8x1xf32>
      %c0_33 = arith.constant 0 : index
      %c0_34 = arith.constant 0 : index
      %54 = vector.load %arg10[%c0_33, %c0_34] : memref<8x1xi32, #tpu.memory_space<vmem>>, vector<8x1xi32>
      %55 = vector.broadcast %54 : vector<8x1xi32> to vector<8x128xi32>
      %56 = arith.cmpi eq, %40, %55 : vector<8x128xi32>
      %cst_35 = arith.constant 0.000000e+00 : f32
      %57 = vector.broadcast %cst_35 : f32 to vector<8x128xf32>
      %58 = arith.select %56, %38, %57 : vector<8x128xi1>, vector<8x128xf32>
      %cst_36 = arith.constant dense<0.000000e+00> : vector<8xf32>
      %59 = vector.multi_reduction <add>, %58, %cst_36 [1] : vector<8x128xf32> to vector<8xf32>
      %60 = vector.shape_cast %59 : vector<8xf32> to vector<8x1xf32>
      %61 = arith.subf %53, %60 : vector<8x1xf32>
      %c0_37 = arith.constant 0 : index
      %c0_38 = arith.constant 0 : index
      %62 = vector.load %arg12[%c0_37, %c0_38] : memref<8x1xf32, #tpu.memory_space<vmem>>, vector<8x1xf32>
      tpu.vector_store %arg12[%c0_37, %c0_38], %61 {strides = array<i32>} : memref<8x1xf32, #tpu.memory_space<vmem>>, vector<8x1xf32>,
    } else {
    }
    return
  }
  func.func @transform_0(%arg0: i32, %arg1: i32) -> (i32, i32, i32) {
    %c0_i32 = arith.constant 0 : i32
    %c0_i32_0 = arith.constant 0 : i32
    return %arg0, %arg1, %c0_i32 : i32, i32, i32
  }
  func.func @transform_1(%arg0: i32, %arg1: i32) -> (i32, i32, i32) {
    %c0_i32 = arith.constant 0 : i32
    %c0_i32_0 = arith.constant 0 : i32
    return %arg0, %arg1, %c0_i32 : i32, i32, i32
  }
  func.func @transform_2(%arg0: i32, %arg1: i32) -> (i32, i32) {
    %c0_i32 = arith.constant 0 : i32
    %c0_i32_0 = arith.constant 0 : i32
    %c0_i32_1 = arith.constant 0 : i32
    return %c0_i32, %c0_i32_0 : i32, i32
  }
  func.func @transform_3(%arg0: i32, %arg1: i32) -> (i32, i32) {
    %c0_i32 = arith.constant 0 : i32
    %c0_i32_0 = arith.constant 0 : i32
    %c0_i32_1 = arith.constant 0 : i32
    return %c0_i32, %c0_i32_0 : i32, i32
  }
  func.func @transform_4(%arg0: i32, %arg1: i32) -> (i32, i32) {
    %c0_i32 = arith.constant 0 : i32
    %c0_i32_0 = arith.constant 0 : i32
    %c0_i32_1 = arith.constant 0 : i32
    return %c0_i32, %c0_i32_0 : i32, i32
  }
  func.func @transform_5(%arg0: i32, %arg1: i32) -> (i32, i32) {
    %c0_i32 = arith.constant 0 : i32
    %c0_i32_0 = arith.constant 0 : i32
    %c0_i32_1 = arith.constant 0 : i32
    return %c0_i32, %c0_i32_0 : i32, i32
  }
  func.func @transform_6(%arg0: i32, %arg1: i32) -> (i32, i32) {
    %c0_i32 = arith.constant 0 : i32
    %c0_i32_0 = arith.constant 0 : i32
    %c0_i32_1 = arith.constant 0 : i32
    return %c0_i32, %c0_i32_0 : i32, i32
  }
  func.func @transform_7(%arg0: i32, %arg1: i32) -> (i32, i32) {
    %c0_i32 = arith.constant 0 : i32
    %c0_i32_0 = arith.constant 0 : i32
    %c0_i32_1 = arith.constant 0 : i32
    return %c0_i32, %c0_i32_0 : i32, i32
  }
  func.func @transform_8(%arg0: i32, %arg1: i32) -> (i32, i32) {
    %c0_i32 = arith.constant 0 : i32
    %c0_i32_0 = arith.constant 0 : i32
    return %arg0, %c0_i32 : i32, i32
  }
  func.func @transform_9(%arg0: i32, %arg1: i32) -> (i32, i32) {
    %c0_i32 = arith.constant 0 : i32
    %c0_i32_0 = arith.constant 0 : i32
    return %arg0, %c0_i32 : i32, i32
  }
  func.func @transform_10(%arg0: i32, %arg1: i32) -> (i32, i32) {
    %c0_i32 = arith.constant 0 : i32
    %c0_i32_0 = arith.constant 0 : i32
    return %arg0, %c0_i32 : i32, i32
  }
}

</mosaic_0001>

<bundles_post_ra>
// kernel: tpu_custom_call.1
= control target key start
LH: loop header
LB: loop body
LE: loop exit
PB: predicated region body
PF: predicated region fallthrough
CT: control target
= control target key end

     0   :  { %16 = vsyncpa [#allocation4], 0  ;;  %s1192_s0 = inlined_call_operand.vmem [shape: bf16[8,16,128], index: 0, kind: input, shape index: {}]   ;;  %s1193_s1 = inlined_call_operand.vmem [shape: f32[8,16,1], index: 1, kind: input, shape index: {}]   ;;  %s1194_s2 = inlined_call_operand.vmem [shape: bf16[128,128], index: 2, kind: input, shape index: {}]   ;;  %s1195_s3 = inlined_call_operand.vmem [shape: f32[1,128], index: 3, kind: input, shape index: {}]   ;;  %s1196_s4 = inlined_call_operand.hbm [shape: bf16[128,128], index: 4, kind: input, shape index: {}]   ;;  %s1197_s5 = inlined_call_operand.vmem [shape: f32[1,128], index: 5, kind: input, shape index: {}]   ;;  %s1198_s6 = inlined_call_operand.hbm [shape: bf16[128,128], index: 6, kind: input, shape index: {}]   ;;  %s1199_s7 = inlined_call_operand.vmem [shape: f32[1,128], index: 7, kind: input, shape index: {}]   ;;  %s1200_s8 = inlined_call_operand.vmem [shape: s32[8,1], index: 8, kind: input, shape index: {}]   ;;  %s1201_s9 = inlined_call_operand.hbm [shape: f32[8,128], index: 9, kind: output, shape index: {0}]   ;;  %s1202_s10 = inlined_call_operand.vmem [shape: f32[8,1], index: 10, kind: output, shape index: {1}]  }
   0x1   :  { %17 = vsyncpa [#allocation7], 0 }
   0x2   :  { %18 = vsyncpa [#allocation5], 0  ;;  %s31_s15 = sshll.u32 %s1196_s4, 4  ;;  %s981_s16 = smov [#allocation3]   ;;  %s32_s15 = int_to_ptr.hbm [resolvable:$true] %s31_s15 }
   0x3   :  { %s33_s17 = sshll.u32 %s981_s16, 4  ;;  %s46_s20 = sshll.u32 %s1198_s6, 4  ;;  %s34_s17 = int_to_ptr.vmem [resolvable:$true] %s33_s17  ;;  %s47_s20 = int_to_ptr.hbm [resolvable:$true] %s46_s20 }
   0x4   :  { %s982_s21 = smov 64   ;;  %s983_s22 = smov 4  }
   0x5   :  { %39 = dma.hbm_to_vmem [thread:$0]  %s32_s15, 1024, %s34_s17, [#allocation4], %s982_s21, %s982_s21, %s983_s22  }
   0x6   :  { %s984_s23 = smov [#allocation6]  }
   0x7   :  { %s48_s24 = sshll.u32 %s984_s23, 4  ;;  %s49_s24 = int_to_ptr.vmem [resolvable:$true] %s48_s24 }
   0x8   :  { %54 = dma.hbm_to_vmem [thread:$0]  %s47_s20, 1024, %s49_s24, [#allocation7], %s982_s21, %s982_s21, %s983_s22  }
   0x9   :  { %975 = dma.done.wait [#allocation4], 1024  }
   0xa   :  { %976 = vsyncadd [#allocation4], 4294966272 }
   0xb   :  { %977 = dma.done.wait [#allocation7], 1024  }
   0xc   :  { %978 = vsyncadd [#allocation7], 4294966272  ;;  %v985_v0 = vmov 0   ;;  %v814_v1 = vld [vmem:[%s1194_s2 + $0x38] sm:$0xff]  ;;  %v269_v2 = vld [vmem:[%s1193_s1] sm:$0xff]  ;;  %vm446_vm0 = vcmask 1041409  }
   0xd   :  { %861 = vset.pattern.permute.xlu0 %v985_v0  ;;  %862 = vset.pattern.permute.xlu1 %v985_v0  ;;  %v813_v3 = vld [vmem:[%s1194_s2 + $0x30] sm:$0xff]  ;;  %v812_v5 = vld [vmem:[%s1194_s2 + $0x28] sm:$0xff]  ;;  %v811_v7 = vld [vmem:[%s1194_s2 + $0x20] sm:$0xff]  ;;  %vm448_vm1 = vcmask 1042434   ;;  %vm450_vm2 = vcmask 1043459   ;;  %vm452_vm3 = vcmask 1044484  }
   0xe   :  { %863 = vset.pattern.permute.xlu2 %v985_v0  ;;  %204 = vmatpush.bf16.msra.mxu0 %v814_v1  ;;  %v271_v4 = vld [vmem:[%s1193_s1 + $0x10] sm:$0xff]  ;;  %v270_v6 = vld [vmem:[%s1193_s1 + $0x8] sm:$0xff]  ;;  %v272_v8 = vld [vmem:[%s1193_s1 + $0x18] sm:$0xff]  ;;  %vm454_vm4 = vcmask 1045509   ;;  %vm456_vm5 = vcmask 1046534   ;;  %vm458_vm6 = vcmask 1047559  }
   0xf   :  { %839 = vmatpush.bf16.msra.mxu1 %v814_v1  ;;  %840 = vmatpush.bf16.msra.mxu3 %v814_v1  ;;  %v810_v9 = vld [vmem:[%s1194_s2 + $0x18] sm:$0xff]  ;;  %v275_v10 = vld [vmem:[%s1193_s1 + $0x30] sm:$0xff]  ;;  %v273_v13 = vld [vmem:[%s1193_s1 + $0x20] sm:$0xff]  ;;  %s664_s6 = sshll.u32 %s1201_s9, 4  ;;  %vm655_vm9 = vcmask 7168   ;;  %s665_s6 = int_to_ptr.hbm [resolvable:$true] %s664_s6 }
  0x10   :  { %288 = vperm.xlu0 %861, %v269_v2   ;;  %298 = vperm.xlu1 %862, %v271_v4   ;;  %v809_v11 = vld [vmem:[%s1194_s2 + $0x10] sm:$0xff]  ;;  %v276_v12 = vld [vmem:[%s1193_s1 + $0x38] sm:$0xff]  ;;  %v808_v14 = vld [vmem:[%s1194_s2 + $0x8] sm:$0xff] }
  0x11   :  { %308 = vperm.xlu2 %863, %v273_v13   ;;  %v278_v15 = vld [vmem:[%s1193_s1 + $0x48] sm:$0xff]  ;;  %v807_v17 = vld [vmem:[%s1194_s2] sm:$0xff]  ;;  %v279_v18 = vld [vmem:[%s1193_s1 + $0x50] sm:$0xff] }
  0x12   :  { %205 = vmatpush.bf16.msra.mxu0 %v813_v3  ;;  %v274_v16 = vld [vmem:[%s1193_s1 + $0x28] sm:$0xff]  ;;  %v815_v19 = vld [vmem:[%s1192_s0] sm:$0xff]  ;;  %v818_v20 = vld [vmem:[%s1192_s0 + $0x18] sm:$0xff] }
  0x13   :  { %841 = vmatpush.bf16.msra.mxu1 %v813_v3  ;;  %842 = vmatpush.bf16.msra.mxu3 %v813_v3  ;;  %v820_v21 = vld [vmem:[%s1192_s0 + $0x28] sm:$0xff]  ;;  %v281_v22 = vld [vmem:[%s1193_s1 + $0x60] sm:$0xff]  ;;  %v284_v25 = vld [vmem:[%s1193_s1 + $0x78] sm:$0xff] }
  0x14   :  { %v282_v23 = vld [vmem:[%s1193_s1 + $0x68] sm:$0xff]  ;;  %v277_v24 = vld [vmem:[%s1193_s1 + $0x40] sm:$0xff]  ;;  %v280_v26 = vld [vmem:[%s1193_s1 + $0x58] sm:$0xff] }
  0x15   :  { %v816_v27 = vld [vmem:[%s1192_s0 + $0x8] sm:$0xff]  ;;  %v819_v28 = vld [vmem:[%s1192_s0 + $0x20] sm:$0xff]  ;;  %v821_v29 = vld [vmem:[%s1192_s0 + $0x30] sm:$0xff] }
  0x16   :  { %206 = vmatpush.bf16.msra.mxu0 %v812_v5  ;;  %v283_v30 = vld [vmem:[%s1193_s1 + $0x70] sm:$0xff]  ;;  %v646_v31 = vld [vmem:[%s1200_s8] sm:$0xff]  ;;  %v822_v33 = vld [vmem:[%s1192_s0 + $0x38] sm:$0xff] }
  0x17   :  { %843 = vmatpush.bf16.msra.mxu1 %v812_v5  ;;  %844 = vmatpush.bf16.msra.mxu3 %v812_v5  ;;  %v817_v32 = vld [vmem:[%s1192_s0 + $0x10] sm:$0xff]  ;;  %v830_v44 = vld [vmem:[#allocation3 + $0x38] sm:$0xff]  ;;  %v1156_v45 = vld [vmem:[%s1195_s3] ss:$0 sm:$0xff] }
  0x18   :  { %293 = vperm.xlu0 %861, %v270_v6   ;;  %303 = vperm.xlu1 %862, %v272_v8   ;;  %v829_v47 = vld [vmem:[#allocation3 + $0x30] sm:$0xff]  ;;  %v828_v53 = vld [vmem:[#allocation3 + $0x28] sm:$0xff]  ;;  %v827_v60 = vld [vmem:[#allocation3 + $0x20] sm:$0xff] }
  0x19   :  { %313 = vperm.xlu2 %863, %v274_v16   ;;  %v826_v4 = vld [vmem:[#allocation3 + $0x18] sm:$0xff] }
  0x1a   :  { %207 = vmatpush.bf16.msra.mxu0 %v811_v7 }
  0x1b   :  { %845 = vmatpush.bf16.msra.mxu1 %v811_v7  ;;  %846 = vmatpush.bf16.msra.mxu3 %v811_v7 }
  0x1e   :  { %208 = vmatpush.bf16.msra.mxu0 %v810_v9 }
  0x1f   :  { %847 = vmatpush.bf16.msra.mxu1 %v810_v9  ;;  %848 = vmatpush.bf16.msra.mxu3 %v810_v9 }
  0x20   :  { %318 = vperm.xlu0 %861, %v275_v10   ;;  %323 = vperm.xlu1 %862, %v276_v12  }
  0x21   :  { %328 = vperm.xlu2 %863, %v277_v24  }
  0x22   :  { %209 = vmatpush.bf16.msra.mxu0 %v809_v11 }
  0x23   :  { %849 = vmatpush.bf16.msra.mxu1 %v809_v11  ;;  %850 = vmatpush.bf16.msra.mxu3 %v809_v11 }
  0x26   :  { %210 = vmatpush.bf16.msra.mxu0 %v808_v14 }
  0x27   :  { %851 = vmatpush.bf16.msra.mxu1 %v808_v14  ;;  %852 = vmatpush.bf16.msra.mxu3 %v808_v14  ;;  %v825_v14 = vld [vmem:[#allocation3 + $0x10] sm:$0xff] }
  0x28   :  { %333 = vperm.xlu0 %861, %v278_v15   ;;  %338 = vperm.xlu1 %862, %v279_v18  }
  0x29   :  { %343 = vperm.xlu2 %863, %v280_v26  }
  0x2a   :  { %211 = vmatpush.bf16.msra.mxu0 %v807_v17 }
  0x2b   :  { %853 = vmatpush.bf16.msra.mxu1 %v807_v17  ;;  %854 = vmatpush.bf16.msra.mxu3 %v807_v17 }
  0x2d   :  { %212 = vmatmul.bf16.vlgmr.msra.gmra.mxu0 %v815_v19  ;;  %v824_v19 = vld [vmem:[#allocation3 + $0x8] sm:$0xff] }
  0x2e   :  { %227 = vmatmul.bf16.vlgmr.msra.gmra.mxu1 %v818_v20  ;;  %237 = vmatmul.bf16.vlgmr.msra.gmra.mxu3 %v820_v21 }
  0x2f   :  { %536 = vmatpush.bf16.msrb.mxu1 %v830_v44 }
  0x30   :  { %348 = vperm.xlu0 %861, %v281_v22   ;;  %353 = vperm.xlu1 %862, %v282_v23  }
  0x31   :  { %358 = vperm.xlu2 %863, %v283_v30  }
  0x33   :  { %537 = vmatpush.bf16.msrb.mxu1 %v829_v47 }
  0x37   :  { %538 = vmatpush.bf16.msrb.mxu1 %v828_v53 }
  0x38   :  { %363 = vperm.xlu0 %861, %v284_v25  }
  0x39   :  { %648 = vperm.xlu2 %863, %v646_v31   ;;  %v823_v31 = vld [vmem:[#allocation3] sm:$0xff] }
  0x3b   :  { %539 = vmatpush.bf16.msrb.mxu1 %v827_v60 }
  0x3d   :  { %217 = vmatmul.bf16.gmra.mxu0 %v816_v27 }
  0x3e   :  { %232 = vmatmul.bf16.gmra.mxu1 %v819_v28  ;;  %242 = vmatmul.bf16.gmra.mxu3 %v821_v29 }
  0x3f   :  { %540 = vmatpush.bf16.msrb.mxu1 %v826_v4 }
  0x43   :  { %541 = vmatpush.bf16.msrb.mxu1 %v825_v14 }
  0x47   :  { %542 = vmatpush.bf16.msrb.mxu1 %v824_v19 }
  0x4b   :  { %543 = vmatpush.bf16.msrb.mxu1 %v823_v31 }
  0x4d   :  { %222 = vmatmul.bf16.gmra.mxu0 %v817_v32 }
  0x4e   :  { %247 = vmatmul.bf16.gmra.mxu3 %v822_v33 }
  0x6b   :  { %v1151_v38 = vpop.permute.xlu2 %308 }
  0x73   :  { %v1158_v50 = vpop.permute.xlu2 %313 }
  0x7b   :  { %v329_v6 = vpop.permute.xlu2 %328 }
  0x82   :  { %v1147_v34 = vpop.permute.xlu1 %298  ;;  %v1149_v37 = vpop.permute.xlu0 %288 }
  0x83   :  { %v344_v33 = vpop.permute.xlu2 %343 }
  0x8a   :  { %v304_v42 = vpop.permute.xlu1 %303  ;;  %v294_v43 = vpop.permute.xlu0 %293 }
  0x92   :  { %v324_v54 = vpop.permute.xlu1 %323  ;;  %v319_v56 = vpop.permute.xlu0 %318 }
  0x9a   :  { %v339_v10 = vpop.permute.xlu1 %338  ;;  %v334_v12 = vpop.permute.xlu0 %333 }
  0xaa   :  { %v213_v35 = vpop.f32.mrf.mxu0 }
  0xab   :  { %v228_v36 = vpop.f32.mrf.mxu1  ;;  %v214_v51 = vadd.f32 %v1156_v45, %v213_v35 }
  0xac   :  { %v229_v52 = vadd.f32 %v1156_v45, %v228_v36 }
  0xad   :  { %867 = vtanh.f32 %v214_v51 }
  0xae   :  { %869 = vtanh.f32 %v229_v52 }
  0xb1   :  { %v238_v39 = vpop.f32.mrf.mxu3 }
  0xb2   :  { %v215_v40 = vpop.f32.mrf.mxu0  ;;  %v239_v61 = vadd.f32 %v1156_v45, %v238_v39 }
  0xb3   :  { %v230_v41 = vpop.f32.mrf.mxu1  ;;  %v216_v55 = vadd.f32 %v1156_v45, %v215_v40  ;;  %v868_v5 = vpop.eup %867 }
  0xb4   :  { %v231_v57 = vadd.f32 %v1156_v45, %v230_v41  ;;  %v870_v7 = vpop.eup %869  ;;  %v366_v28 = vmul.f32 %v868_v5, %v1149_v37 }
  0xb5   :  { %871 = vtanh.f32 %v216_v55  ;;  %v372_v32 = vmul.f32 %v870_v7, %v319_v56 }
  0xb6   :  { %873 = vtanh.f32 %v231_v57 }
  0xb9   :  { %v240_v46 = vpop.f32.mrf.mxu3 }
  0xba   :  { %v218_v48 = vpop.f32.mrf.mxu0  ;;  %v241_v2 = vadd.f32 %v1156_v45, %v240_v46  ;;  %v354_v46 = vpop.permute.xlu1 %353 }
  0xbb   :  { %v233_v49 = vpop.f32.mrf.mxu1  ;;  %v219_v58 = vadd.f32 %v1156_v45, %v218_v48  ;;  %v872_v9 = vpop.eup %871 }
  0xbc   :  { %v234_v3 = vadd.f32 %v1156_v45, %v233_v49  ;;  %v874_v11 = vpop.eup %873  ;;  %v367_v23 = vmul.f32 %v872_v9, %v294_v43  ;;  %v349_v48 = vpop.permute.xlu0 %348 }
  0xbd   :  { %875 = vtanh.f32 %v219_v58  ;;  %v373_v26 = vmul.f32 %v874_v11, %v324_v54  ;;  %v838_v58 = vld [vmem:[#allocation6 + $0x38] sm:$0xff]  ;;  %v836_v11 = vld [vmem:[#allocation6 + $0x28] sm:$0xff] }
  0xbe   :  { %v382_v39 = vadd.f32 %v367_v23, %v366_v28  ;;  %618 = vmatpush.bf16.msra.mxu2 %v838_v58 }
  0xbf   :  { %v403_v43 = vadd.f32 %v373_v26, %v372_v32  ;;  %v834_v32 = vld [vmem:[#allocation6 + $0x18] sm:$0xff] }
  0xc0   :  { %v383_v54 = vrot.slane %v382_v39, 4 }
  0xc1   :  { %v243_v59 = vpop.f32.mrf.mxu3 }
  0xc2   :  { %v220_v62 = vpop.f32.mrf.mxu0  ;;  %v244_v8 = vadd.f32 %v1156_v45, %v243_v59  ;;  %v404_v59 = vrot.slane %v403_v43, 4 }
  0xc3   :  { %v235_v63 = vpop.f32.mrf.mxu1  ;;  %v221_v0 = vadd.f32 %v1156_v45, %v220_v62  ;;  %v876_v15 = vpop.eup %875  ;;  %v837_v62 = vld [vmem:[#allocation6 + $0x30] sm:$0xff] }
  0xc4   :  { %v236_v1 = vadd.f32 %v1156_v45, %v235_v63  ;;  %v368_v24 = vmul.f32 %v876_v15, %v1147_v34  ;;  %619 = vmatpush.bf16.msra.mxu2 %v837_v62 }
  0xc5   :  { %877 = vtanh.f32 %v221_v0  ;;  %v384_v0 = vadd.f32 %v383_v54, %v382_v39 }
  0xc6   :  { %879 = vtanh.f32 %v239_v61 }
  0xc7   :  { %881 = vtanh.f32 %v236_v1 }
  0xc8   :  { %883 = vtanh.f32 %v241_v2  ;;  %620 = vmatpush.bf16.msra.mxu2 %v836_v11  ;;  %v632_v11 = vlaneseq }
  0xc9   :  { %885 = vtanh.f32 %v234_v3  ;;  %v245_v13 = vpop.f32.mrf.mxu3 }
  0xca   :  { %v246_v16 = vadd.f32 %v1156_v45, %v245_v13  ;;  %v223_v17 = vpop.f32.mrf.mxu0  ;;  %887 = vtanh.f32 %v244_v8 }
  0xcb   :  { %v878_v18 = vpop.eup %877  ;;  %v224_v30 = vadd.f32 %v1156_v45, %v223_v17 }
  0xcc   :  { %v880_v20 = vpop.eup %879  ;;  %v369_v21 = vmul.f32 %v878_v18, %v304_v42  ;;  %889 = vtanh.f32 %v246_v16 }
  0xcd   :  { %v882_v22 = vpop.eup %881  ;;  %v376_v34 = vmul.f32 %v880_v20, %v339_v10  ;;  %891 = vtanh.f32 %v224_v30  ;;  %v835_v20 = vld [vmem:[#allocation6 + $0x20] sm:$0xff] }
  0xce   :  { %v884_v25 = vpop.eup %883  ;;  %v389_v29 = vadd.f32 %v369_v21, %v368_v24  ;;  %v375_v35 = vmul.f32 %v882_v22, %v334_v12  ;;  %v385_v12 = vrot.slane %v384_v0, 2  ;;  %v364_v24 = vpop.permute.xlu0 %363  ;;  %621 = vmatpush.bf16.msra.mxu2 %v835_v20 }
  0xcf   :  { %v886_v27 = vpop.eup %885  ;;  %v377_v40 = vmul.f32 %v884_v25, %v344_v33 }
  0xd0   :  { %v888_v36 = vpop.eup %887  ;;  %v374_v44 = vmul.f32 %v886_v27, %v329_v6  ;;  %v390_v37 = vrot.slane %v389_v29, 4  ;;  %v405_v6 = vadd.f32 %v404_v59, %v403_v43  ;;  %v386_v21 = vadd.f32 %v385_v12, %v384_v0  ;;  %v866_v12 = vld [vmem:[%s1199_s7] ss:$0 sm:$0xff] }
  0xd1   :  { %v248_v41 = vpop.f32.mrf.mxu3  ;;  %v378_v52 = vmul.f32 %v888_v36, %v349_v48  ;;  %v417_v55 = vadd.f32 %v377_v40, %v376_v34 }
  0xd2   :  { %v890_v42 = vpop.eup %889  ;;  %v225_v47 = vpop.f32.mrf.mxu0  ;;  %v410_v53 = vadd.f32 %v375_v35, %v374_v44  ;;  %v249_v57 = vadd.f32 %v1156_v45, %v248_v41  ;;  %v391_v60 = vadd.f32 %v390_v37, %v389_v29  ;;  %v406_v16 = vrot.slane %v405_v6, 2  ;;  %622 = vmatpush.bf16.msra.mxu2 %v834_v32 }
  0xd3   :  { %v379_v49 = vmul.f32 %v890_v42, %v354_v46  ;;  %v226_v51 = vadd.f32 %v1156_v45, %v225_v47  ;;  %v892_v63 = vpop.eup %891  ;;  %v418_v1 = vrot.slane %v417_v55, 4  ;;  %v387_v33 = vrot.slane %v386_v21, 1  ;;  %v833_v46 = vld [vmem:[#allocation6 + $0x10] sm:$0xff] }
  0xd4   :  { %v411_v61 = vrot.slane %v410_v53, 4  ;;  %v392_v7 = vrot.slane %v391_v60, 2  ;;  %v370_v9 = vmul.f32 %v892_v63, %v1151_v38  ;;  %v359_v38 = vpop.permute.xlu2 %358  ;;  %v407_v26 = vadd.f32 %v406_v16, %v405_v6  ;;  %v865_v6 = vld [vmem:[%s1197_s5] ss:$0 sm:$0xff]  ;;  %s986_s5 = smov [#allocation8]  }
  0xd5   :  { %893 = vtanh.f32 %v226_v51  ;;  %v424_v56 = vadd.f32 %v379_v49, %v378_v52  ;;  %v419_v13 = vadd.f32 %v418_v1, %v417_v55  ;;  %v388_v47 = vadd.f32 %v387_v33, %v386_v21  ;;  %s662_s4 = sshll.u32 %s986_s5, 4  ;;  %s663_s4 = int_to_ptr.vmem [resolvable:$true] %s662_s4 }
  0xd6   :  { %895 = vtanh.f32 %v249_v57  ;;  %v412_v8 = vadd.f32 %v411_v61, %v410_v53  ;;  %v393_v17 = vadd.f32 %v392_v7, %v391_v60  ;;  %v408_v41 = vrot.slane %v407_v26, 1  ;;  %623 = vmatpush.bf16.msra.mxu2 %v833_v46  ;;  %v832_v57 = vld [vmem:[#allocation6 + $0x8] sm:$0xff] }
  0xd7   :  { %v425_v3 = vrot.slane %v424_v56, 4  ;;  %v420_v22 = vrot.slane %v419_v13, 2 }
  0xd8   :  { %v413_v19 = vrot.slane %v412_v8, 2  ;;  %v394_v27 = vrot.slane %v393_v17, 1  ;;  %v409_v52 = vadd.f32 %v408_v41, %v407_v26 }
  0xd9   :  { %v250_v2 = vpop.f32.mrf.mxu3  ;;  %v426_v14 = vadd.f32 %v425_v3, %v424_v56  ;;  %v421_v35 = vadd.f32 %v420_v22, %v419_v13  ;;  %v633_v13 = vand.u32 127, %v632_v11 }
  0xda   :  { %v251_v4 = vadd.f32 %v1156_v45, %v250_v2  ;;  %v414_v30 = vadd.f32 %v413_v19, %v412_v8  ;;  %v395_v42 = vadd.f32 %v394_v27, %v393_v17  ;;  %624 = vmatpush.bf16.msra.mxu2 %v832_v57 }
  0xdb   :  { %v894_v5 = vpop.eup %893  ;;  %v422_v37 = vrot.slane %v421_v35, 1  ;;  %vm634_vm7 = vcmp.lt.s32.totalorder %v633_v13, 4 }
  0xdc   :  { %v371_v10 = vmul.f32 %v894_v5, %v1158_v50  ;;  %897 = vtanh.f32 %v251_v4  ;;  %v896_v18 = vpop.eup %895  ;;  %v427_v50 = vrot.slane %v426_v14, 2  ;;  %v415_v34 = vrot.slane %v414_v30, 1  ;;  %v831_v5 = vld [vmem:[#allocation6] sm:$0xff] }
  0xdd   :  { %v380_v28 = vmul.f32 %v896_v18, %v359_v38  ;;  %v447_v54 = vsel %vm446_vm0, %v395_v42, %v388_v47  ;;  %v423_v58 = vadd.f32 %v422_v37, %v421_v35 }
  0xde   :  { %v396_v15 = vadd.f32 %v371_v10, %v370_v9  ;;  %v428_v40 = vadd.f32 %v427_v50, %v426_v14  ;;  %v416_v55 = vadd.f32 %v415_v34, %v414_v30  ;;  %625 = vmatpush.bf16.msra.mxu2 %v831_v5  ;;  %v649_v14 = vpop.permute.xlu2 %648 }
  0xdf   :  { %vm650_vm8 = vcmp.eq.s32.totalorder %v633_v13, %v649_v14 }
  0xe0   :  { %v397_v45 = vrot.slane %v396_v15, 4  ;;  %v429_v51 = vrot.slane %v428_v40, 1 }
  0xe2   :  { %v898_v23 = vpop.eup %897  ;;  %v398_v25 = vadd.f32 %v397_v45, %v396_v15  ;;  %v430_v61 = vadd.f32 %v429_v51, %v428_v40 }
  0xe3   :  { %v381_v29 = vmul.f32 %v898_v23, %v364_v24 }
  0xe4   :  { %v399_v31 = vrot.slane %v398_v25, 2 }
  0xe5   :  { %v431_v36 = vadd.f32 %v381_v29, %v380_v28 }
  0xe6   :  { %v400_v39 = vadd.f32 %v399_v31, %v398_v25 }
  0xe7   :  { %v432_v43 = vrot.slane %v431_v36, 4 }
  0xe8   :  { %v401_v44 = vrot.slane %v400_v39, 1 }
  0xe9   :  { %v433_v48 = vadd.f32 %v432_v43, %v431_v36 }
  0xea   :  { %v402_v49 = vadd.f32 %v401_v44, %v400_v39 }
  0xeb   :  { %v434_v53 = vrot.slane %v433_v48, 2 }
  0xec   :  { %v449_v56 = vsel %vm448_vm1, %v402_v49, %v447_v54 }
  0xed   :  { %v435_v59 = vadd.f32 %v434_v53, %v433_v48  ;;  %v451_v60 = vsel %vm450_vm2, %v409_v52, %v449_v56 }
  0xee   :  { %v453_v62 = vsel %vm452_vm3, %v416_v55, %v451_v60 }
  0xef   :  { %v436_v63 = vrot.slane %v435_v59, 1  ;;  %v455_v0 = vsel %vm454_vm4, %v423_v58, %v453_v62 }
  0xf0   :  { %v457_v1 = vsel %vm456_vm5, %v430_v61, %v455_v0 }
  0xf1   :  { %v437_v2 = vadd.f32 %v436_v63, %v435_v59 }
  0xf3   :  { %v459_v3 = vsel %vm458_vm6, %v437_v2, %v457_v1 }
  0xf4   :  { %v467_v4 = vpack.c.bf16 %v459_v3, %v459_v3 }
  0xf6   :  { %544 = vmatmul.bf16.vlgmr.msrb.gmra.mxu1 %v467_v4 }
 0x173   :  { %v545_v7 = vpop.f32.mrf.mxu1 }
 0x174   :  { %v546_v8 = vadd.f32 %v865_v6, %v545_v7 }
 0x176   :  { %v549_v9 = vpack.c.bf16 %v546_v8, %v546_v8 }
 0x178   :  { %626 = vmatmul.bf16.vlgmr.msra.gmra.mxu2 %v549_v9 }
 0x17b   :  { %v547_v10 = vpop.f32.mrf.mxu1 }
 0x1fb   :  { %v627_v15 = vpop.f32.mrf.mxu2 }
 0x1fc   :  { %v628_v16 = vadd.f32 %v866_v12, %v627_v15 }
 0x1fe   :  { %631 = vst [vmem:[#allocation8] sm:$0xff] %v628_v16  ;;  %v651_v17 = vsel %vm650_vm8, %v628_v16, 0.0  ;;  %v635_v18 = vsel %vm634_vm7, %v628_v16, -1e+30 }
 0x1ff   :  { %652 = vadd.xlane.f32.xlu2 %v651_v17  ;;  %636 = vmax.xlane.f32.xlu1 %v635_v18  ;;  %667 = dma.vmem_to_hbm [thread:$0]  %s663_s4, 128, %s665_s6, [#allocation5]  }
 0x203   :  { %v629_v19 = vpop.f32.mrf.mxu2 }
 0x272   :  { %v637_v45 = vpop.xlane.xlu1 %636  ;;  %v653_v25 = vpop.xlane.xlu2 %652 }
 0x273   :  { %v638_v20 = vsub.f32 %v635_v18, %v637_v45 }
 0x275   :  { %v639_v21 = vmul.f32 1.442695, %v638_v20 }
 0x277   :  { %899 = vpow2.f32 %v639_v21 }
 0x27d   :  { %v900_v22 = vpop.eup %899 }
 0x27e   :  { %641 = vadd.xlane.f32.xlu0 %v900_v22 }
 0x2f1   :  { %v642_v23 = vpop.xlane.xlu0 %641 }
 0x2f2   :  { %901 = vlog2.f32 %v642_v23 }
 0x2f8   :  { %v902_v38 = vpop.eup %901 }
 0x2f9   :  { %v644_v24 = vmul.f32 0.6931472, %v902_v38 }
 0x2fb   :  { %v645_v50 = vadd.f32 %v644_v24, %v637_v45 }
 0x2fd   :  { %v654_v26 = vsub.f32 %v645_v50, %v653_v25 }
 0x2ff   :  { %656 = vst.msk [vmem:[%s1202_s10] sm:$0xff] %vm655_vm9, %v654_v26 }
 0x300   :  { %979 = dma.done.wait [#allocation5], 128  }
 0x301   :  { %980 = vsyncadd [#allocation5], 4294967168 }
 0x302   :  { %676 = vsyncpa [#allocation4], 1 }
 0x303   :  { %677 = vsyncpa [#allocation7], 1 }
 0x304   :  { %678 = vsyncpa [#allocation5], 1 }

// kernel: tpu_custom_call.1
= control target key start
LH: loop header
LB: loop body
LE: loop exit
PB: predicated region body
PF: predicated region fallthrough
CT: control target
= control target key end

     0   :  { %16 = vsyncpa [#allocation4], 0  ;;  %s1192_s0 = inlined_call_operand.vmem [shape: bf16[8,16,128], index: 0, kind: input, shape index: {}]   ;;  %s1193_s1 = inlined_call_operand.vmem [shape: f32[8,16,1], index: 1, kind: input, shape index: {}]   ;;  %s1194_s2 = inlined_call_operand.vmem [shape: bf16[128,128], index: 2, kind: input, shape index: {}]   ;;  %s1195_s3 = inlined_call_operand.vmem [shape: f32[1,128], index: 3, kind: input, shape index: {}]   ;;  %s1196_s4 = inlined_call_operand.hbm [shape: bf16[128,128], index: 4, kind: input, shape index: {}]   ;;  %s1197_s5 = inlined_call_operand.vmem [shape: f32[1,128], index: 5, kind: input, shape index: {}]   ;;  %s1198_s6 = inlined_call_operand.hbm [shape: bf16[128,128], index: 6, kind: input, shape index: {}]   ;;  %s1199_s7 = inlined_call_operand.vmem [shape: f32[1,128], index: 7, kind: input, shape index: {}]   ;;  %s1200_s8 = inlined_call_operand.vmem [shape: s32[8,1], index: 8, kind: input, shape index: {}]   ;;  %s1201_s9 = inlined_call_operand.hbm [shape: f32[8,128], index: 9, kind: output, shape index: {0}]   ;;  %s1202_s10 = inlined_call_operand.vmem [shape: f32[8,1], index: 10, kind: output, shape index: {1}]  }
   0x1   :  { %17 = vsyncpa [#allocation7], 0 }
   0x2   :  { %18 = vsyncpa [#allocation5], 0  ;;  %s31_s15 = sshll.u32 %s1196_s4, 4  ;;  %s981_s16 = smov [#allocation3]   ;;  %s32_s15 = int_to_ptr.hbm [resolvable:$true] %s31_s15 }
   0x3   :  { %s33_s17 = sshll.u32 %s981_s16, 4  ;;  %s46_s20 = sshll.u32 %s1198_s6, 4  ;;  %s34_s17 = int_to_ptr.vmem [resolvable:$true] %s33_s17  ;;  %s47_s20 = int_to_ptr.hbm [resolvable:$true] %s46_s20 }
   0x4   :  { %s982_s21 = smov 64   ;;  %s983_s22 = smov 4  }
   0x5   :  { %39 = dma.hbm_to_vmem [thread:$0]  %s32_s15, 1024, %s34_s17, [#allocation4], %s982_s21, %s982_s21, %s983_s22  }
   0x6   :  { %s984_s23 = smov [#allocation6]  }
   0x7   :  { %s48_s24 = sshll.u32 %s984_s23, 4  ;;  %s49_s24 = int_to_ptr.vmem [resolvable:$true] %s48_s24 }
   0x8   :  { %54 = dma.hbm_to_vmem [thread:$0]  %s47_s20, 1024, %s49_s24, [#allocation7], %s982_s21, %s982_s21, %s983_s22  }
   0x9   :  { %975 = dma.done.wait [#allocation4], 1024  }
   0xa   :  { %976 = vsyncadd [#allocation4], 4294966272 }
   0xb   :  { %977 = dma.done.wait [#allocation7], 1024  }
   0xc   :  { %978 = vsyncadd [#allocation7], 4294966272  ;;  %v985_v0 = vmov 0   ;;  %v814_v1 = vld [vmem:[%s1194_s2 + $0x38] sm:$0xff]  ;;  %v269_v2 = vld [vmem:[%s1193_s1] sm:$0xff]  ;;  %vm446_vm0 = vcmask 1041409  }
   0xd   :  { %861 = vset.pattern.permute.xlu0 %v985_v0  ;;  %862 = vset.pattern.permute.xlu1 %v985_v0  ;;  %v813_v3 = vld [vmem:[%s1194_s2 + $0x30] sm:$0xff]  ;;  %v812_v5 = vld [vmem:[%s1194_s2 + $0x28] sm:$0xff]  ;;  %v811_v7 = vld [vmem:[%s1194_s2 + $0x20] sm:$0xff]  ;;  %vm448_vm1 = vcmask 1042434   ;;  %vm450_vm2 = vcmask 1043459   ;;  %vm452_vm3 = vcmask 1044484  }
   0xe   :  { %863 = vset.pattern.permute.xlu2 %v985_v0  ;;  %204 = vmatpush.bf16.msra.mxu0 %v814_v1  ;;  %v271_v4 = vld [vmem:[%s1193_s1 + $0x10] sm:$0xff]  ;;  %v270_v6 = vld [vmem:[%s1193_s1 + $0x8] sm:$0xff]  ;;  %v272_v8 = vld [vmem:[%s1193_s1 + $0x18] sm:$0xff]  ;;  %vm454_vm4 = vcmask 1045509   ;;  %vm456_vm5 = vcmask 1046534   ;;  %vm458_vm6 = vcmask 1047559  }
   0xf   :  { %839 = vmatpush.bf16.msra.mxu1 %v814_v1  ;;  %840 = vmatpush.bf16.msra.mxu3 %v814_v1  ;;  %v810_v9 = vld [vmem:[%s1194_s2 + $0x18] sm:$0xff]  ;;  %v275_v10 = vld [vmem:[%s1193_s1 + $0x30] sm:$0xff]  ;;  %v273_v13 = vld [vmem:[%s1193_s1 + $0x20] sm:$0xff]  ;;  %s664_s6 = sshll.u32 %s1201_s9, 4  ;;  %vm655_vm9 = vcmask 7168   ;;  %s665_s6 = int_to_ptr.hbm [resolvable:$true] %s664_s6 }
  0x10   :  { %288 = vperm.xlu0 %861, %v269_v2   ;;  %298 = vperm.xlu1 %862, %v271_v4   ;;  %v809_v11 = vld [vmem:[%s1194_s2 + $0x10] sm:$0xff]  ;;  %v276_v12 = vld [vmem:[%s1193_s1 + $0x38] sm:$0xff]  ;;  %v808_v14 = vld [vmem:[%s1194_s2 + $0x8] sm:$0xff] }
  0x11   :  { %308 = vperm.xlu2 %863, %v273_v13   ;;  %v278_v15 = vld [vmem:[%s1193_s1 + $0x48] sm:$0xff]  ;;  %v807_v17 = vld [vmem:[%s1194_s2] sm:$0xff]  ;;  %v279_v18 = vld [vmem:[%s1193_s1 + $0x50] sm:$0xff] }
  0x12   :  { %205 = vmatpush.bf16.msra.mxu0 %v813_v3  ;;  %v274_v16 = vld [vmem:[%s1193_s1 + $0x28] sm:$0xff]  ;;  %v815_v19 = vld [vmem:[%s1192_s0] sm:$0xff]  ;;  %v818_v20 = vld [vmem:[%s1192_s0 + $0x18] sm:$0xff] }
  0x13   :  { %841 = vmatpush.bf16.msra.mxu1 %v813_v3  ;;  %842 = vmatpush.bf16.msra.mxu3 %v813_v3  ;;  %v820_v21 = vld [vmem:[%s1192_s0 + $0x28] sm:$0xff]  ;;  %v281_v22 = vld [vmem:[%s1193_s1 + $0x60] sm:$0xff]  ;;  %v284_v25 = vld [vmem:[%s1193_s1 + $0x78] sm:$0xff] }
  0x14   :  { %v282_v23 = vld [vmem:[%s1193_s1 + $0x68] sm:$0xff]  ;;  %v277_v24 = vld [vmem:[%s1193_s1 + $0x40] sm:$0xff]  ;;  %v280_v26 = vld [vmem:[%s1193_s1 + $0x58] sm:$0xff] }
  0x15   :  { %v816_v27 = vld [vmem:[%s1192_s0 + $0x8] sm:$0xff]  ;;  %v819_v28 = vld [vmem:[%s1192_s0 + $0x20] sm:$0xff]  ;;  %v821_v29 = vld [vmem:[%s1192_s0 + $0x30] sm:$0xff] }
  0x16   :  { %206 = vmatpush.bf16.msra.mxu0 %v812_v5  ;;  %v283_v30 = vld [vmem:[%s1193_s1 + $0x70] sm:$0xff]  ;;  %v646_v31 = vld [vmem:[%s1200_s8] sm:$0xff]  ;;  %v822_v33 = vld [vmem:[%s1192_s0 + $0x38] sm:$0xff] }
  0x17   :  { %843 = vmatpush.bf16.msra.mxu1 %v812_v5  ;;  %844 = vmatpush.bf16.msra.mxu3 %v812_v5  ;;  %v817_v32 = vld [vmem:[%s1192_s0 + $0x10] sm:$0xff]  ;;  %v830_v44 = vld [vmem:[#allocation3 + $0x38] sm:$0xff]  ;;  %v1156_v45 = vld [vmem:[%s1195_s3] ss:$0 sm:$0xff] }
  0x18   :  { %293 = vperm.xlu0 %861, %v270_v6   ;;  %303 = vperm.xlu1 %862, %v272_v8   ;;  %v829_v47 = vld [vmem:[#allocation3 + $0x30] sm:$0xff]  ;;  %v828_v53 = vld [vmem:[#allocation3 + $0x28] sm:$0xff]  ;;  %v827_v60 = vld [vmem:[#allocation3 + $0x20] sm:$0xff] }
  0x19   :  { %313 = vperm.xlu2 %863, %v274_v16   ;;  %v826_v4 = vld [vmem:[#allocation3 + $0x18] sm:$0xff] }
  0x1a   :  { %207 = vmatpush.bf16.msra.mxu0 %v811_v7 }
  0x1b   :  { %845 = vmatpush.bf16.msra.mxu1 %v811_v7  ;;  %846 = vmatpush.bf16.msra.mxu3 %v811_v7 }
  0x1e   :  { %208 = vmatpush.bf16.msra.mxu0 %v810_v9 }
  0x1f   :  { %847 = vmatpush.bf16.msra.mxu1 %v810_v9  ;;  %848 = vmatpush.bf16.msra.mxu3 %v810_v9 }
  0x20   :  { %318 = vperm.xlu0 %861, %v275_v10   ;;  %323 = vperm.xlu1 %862, %v276_v12  }
  0x21   :  { %328 = vperm.xlu2 %863, %v277_v24  }
  0x22   :  { %209 = vmatpush.bf16.msra.mxu0 %v809_v11 }
  0x23   :  { %849 = vmatpush.bf16.msra.mxu1 %v809_v11  ;;  %850 = vmatpush.bf16.msra.mxu3 %v809_v11 }
  0x26   :  { %210 = vmatpush.bf16.msra.mxu0 %v808_v14 }
  0x27   :  { %851 = vmatpush.bf16.msra.mxu1 %v808_v14  ;;  %852 = vmatpush.bf16.msra.mxu3 %v808_v14  ;;  %v825_v14 = vld [vmem:[#allocation3 + $0x10] sm:$0xff] }
  0x28   :  { %333 = vperm.xlu0 %861, %v278_v15   ;;  %338 = vperm.xlu1 %862, %v279_v18  }
  0x29   :  { %343 = vperm.xlu2 %863, %v280_v26  }
  0x2a   :  { %211 = vmatpush.bf16.msra.mxu0 %v807_v17 }
  0x2b   :  { %853 = vmatpush.bf16.msra.mxu1 %v807_v17  ;;  %854 = vmatpush.bf16.msra.mxu3 %v807_v17 }
  0x2d   :  { %212 = vmatmul.bf16.vlgmr.msra.gmra.mxu0 %v815_v19  ;;  %v824_v19 = vld [vmem:[#allocation3 + $0x8] sm:$0xff] }
  0x2e   :  { %227 = vmatmul.bf16.vlgmr.msra.gmra.mxu1 %v818_v20  ;;  %237 = vmatmul.bf16.vlgmr.msra.gmra.mxu3 %v820_v21 }
  0x2f   :  { %536 = vmatpush.bf16.msrb.mxu1 %v830_v44 }
  0x30   :  { %348 = vperm.xlu0 %861, %v281_v22   ;;  %353 = vperm.xlu1 %862, %v282_v23  }
  0x31   :  { %358 = vperm.xlu2 %863, %v283_v30  }
  0x33   :  { %537 = vmatpush.bf16.msrb.mxu1 %v829_v47 }
  0x37   :  { %538 = vmatpush.bf16.msrb.mxu1 %v828_v53 }
  0x38   :  { %363 = vperm.xlu0 %861, %v284_v25  }
  0x39   :  { %648 = vperm.xlu2 %863, %v646_v31   ;;  %v823_v31 = vld [vmem:[#allocation3] sm:$0xff] }
  0x3b   :  { %539 = vmatpush.bf16.msrb.mxu1 %v827_v60 }
  0x3d   :  { %217 = vmatmul.bf16.gmra.mxu0 %v816_v27 }
  0x3e   :  { %232 = vmatmul.bf16.gmra.mxu1 %v819_v28  ;;  %242 = vmatmul.bf16.gmra.mxu3 %v821_v29 }
  0x3f   :  { %540 = vmatpush.bf16.msrb.mxu1 %v826_v4 }
  0x43   :  { %541 = vmatpush.bf16.msrb.mxu1 %v825_v14 }
  0x47   :  { %542 = vmatpush.bf16.msrb.mxu1 %v824_v19 }
  0x4b   :  { %543 = vmatpush.bf16.msrb.mxu1 %v823_v31 }
  0x4d   :  { %222 = vmatmul.bf16.gmra.mxu0 %v817_v32 }
  0x4e   :  { %247 = vmatmul.bf16.gmra.mxu3 %v822_v33 }
  0x6b   :  { %v1151_v38 = vpop.permute.xlu2 %308 }
  0x73   :  { %v1158_v50 = vpop.permute.xlu2 %313 }
  0x7b   :  { %v329_v6 = vpop.permute.xlu2 %328 }
  0x82   :  { %v1147_v34 = vpop.permute.xlu1 %298  ;;  %v1149_v37 = vpop.permute.xlu0 %288 }
  0x83   :  { %v344_v33 = vpop.permute.xlu2 %343 }
  0x8a   :  { %v304_v42 = vpop.permute.xlu1 %303  ;;  %v294_v43 = vpop.permute.xlu0 %293 }
  0x92   :  { %v324_v54 = vpop.permute.xlu1 %323  ;;  %v319_v56 = vpop.permute.xlu0 %318 }
  0x9a   :  { %v339_v10 = vpop.permute.xlu1 %338  ;;  %v334_v12 = vpop.permute.xlu0 %333 }
  0xaa   :  { %v213_v35 = vpop.f32.mrf.mxu0 }
  0xab   :  { %v228_v36 = vpop.f32.mrf.mxu1  ;;  %v214_v51 = vadd.f32 %v1156_v45, %v213_v35 }
  0xac   :  { %v229_v52 = vadd.f32 %v1156_v45, %v228_v36 }
  0xad   :  { %867 = vtanh.f32 %v214_v51 }
  0xae   :  { %869 = vtanh.f32 %v229_v52 }
  0xb1   :  { %v238_v39 = vpop.f32.mrf.mxu3 }
  0xb2   :  { %v215_v40 = vpop.f32.mrf.mxu0  ;;  %v239_v61 = vadd.f32 %v1156_v45, %v238_v39 }
  0xb3   :  { %v230_v41 = vpop.f32.mrf.mxu1  ;;  %v216_v55 = vadd.f32 %v1156_v45, %v215_v40  ;;  %v868_v5 = vpop.eup %867 }
  0xb4   :  { %v231_v57 = vadd.f32 %v1156_v45, %v230_v41  ;;  %v870_v7 = vpop.eup %869  ;;  %v366_v28 = vmul.f32 %v868_v5, %v1149_v37 }
  0xb5   :  { %871 = vtanh.f32 %v216_v55  ;;  %v372_v32 = vmul.f32 %v870_v7, %v319_v56 }
  0xb6   :  { %873 = vtanh.f32 %v231_v57 }
  0xb9   :  { %v240_v46 = vpop.f32.mrf.mxu3 }
  0xba   :  { %v218_v48 = vpop.f32.mrf.mxu0  ;;  %v241_v2 = vadd.f32 %v1156_v45, %v240_v46  ;;  %v354_v46 = vpop.permute.xlu1 %353 }
  0xbb   :  { %v233_v49 = vpop.f32.mrf.mxu1  ;;  %v219_v58 = vadd.f32 %v1156_v45, %v218_v48  ;;  %v872_v9 = vpop.eup %871 }
  0xbc   :  { %v234_v3 = vadd.f32 %v1156_v45, %v233_v49  ;;  %v874_v11 = vpop.eup %873  ;;  %v367_v23 = vmul.f32 %v872_v9, %v294_v43  ;;  %v349_v48 = vpop.permute.xlu0 %348 }
  0xbd   :  { %875 = vtanh.f32 %v219_v58  ;;  %v373_v26 = vmul.f32 %v874_v11, %v324_v54  ;;  %v838_v58 = vld [vmem:[#allocation6 + $0x38] sm:$0xff]  ;;  %v836_v11 = vld [vmem:[#allocation6 + $0x28] sm:$0xff] }
  0xbe   :  { %v382_v39 = vadd.f32 %v367_v23, %v366_v28  ;;  %618 = vmatpush.bf16.msra.mxu2 %v838_v58 }
  0xbf   :  { %v403_v43 = vadd.f32 %v373_v26, %v372_v32  ;;  %v834_v32 = vld [vmem:[#allocation6 + $0x18] sm:$0xff] }
  0xc0   :  { %v383_v54 = vrot.slane %v382_v39, 4 }
  0xc1   :  { %v243_v59 = vpop.f32.mrf.mxu3 }
  0xc2   :  { %v220_v62 = vpop.f32.mrf.mxu0  ;;  %v244_v8 = vadd.f32 %v1156_v45, %v243_v59  ;;  %v404_v59 = vrot.slane %v403_v43, 4 }
  0xc3   :  { %v235_v63 = vpop.f32.mrf.mxu1  ;;  %v221_v0 = vadd.f32 %v1156_v45, %v220_v62  ;;  %v876_v15 = vpop.eup %875  ;;  %v837_v62 = vld [vmem:[#allocation6 + $0x30] sm:$0xff] }
  0xc4   :  { %v236_v1 = vadd.f32 %v1156_v45, %v235_v63  ;;  %v368_v24 = vmul.f32 %v876_v15, %v1147_v34  ;;  %619 = vmatpush.bf16.msra.mxu2 %v837_v62 }
  0xc5   :  { %877 = vtanh.f32 %v221_v0  ;;  %v384_v0 = vadd.f32 %v383_v54, %v382_v39 }
  0xc6   :  { %879 = vtanh.f32 %v239_v61 }
  0xc7   :  { %881 = vtanh.f32 %v236_v1 }
  0xc8   :  { %883 = vtanh.f32 %v241_v2  ;;  %620 = vmatpush.bf16.msra.mxu2 %v836_v11  ;;  %v632_v11 = vlaneseq }
  0xc9   :  { %885 = vtanh.f32 %v234_v3  ;;  %v245_v13 = vpop.f32.mrf.mxu3 }
  0xca   :  { %v246_v16 = vadd.f32 %v1156_v45, %v245_v13  ;;  %v223_v17 = vpop.f32.mrf.mxu0  ;;  %887 = vtanh.f32 %v244_v8 }
  0xcb   :  { %v878_v18 = vpop.eup %877  ;;  %v224_v30 = vadd.f32 %v1156_v45, %v223_v17 }
  0xcc   :  { %v880_v20 = vpop.eup %879  ;;  %v369_v21 = vmul.f32 %v878_v18, %v304_v42  ;;  %889 = vtanh.f32 %v246_v16 }
  0xcd   :  { %v882_v22 = vpop.eup %881  ;;  %v376_v34 = vmul.f32 %v880_v20, %v339_v10  ;;  %891 = vtanh.f32 %v224_v30  ;;  %v835_v20 = vld [vmem:[#allocation6 + $0x20] sm:$0xff] }
  0xce   :  { %v884_v25 = vpop.eup %883  ;;  %v389_v29 = vadd.f32 %v369_v21, %v368_v24  ;;  %v375_v35 = vmul.f32 %v882_v22, %v334_v12  ;;  %v385_v12 = vrot.slane %v384_v0, 2  ;;  %v364_v24 = vpop.permute.xlu0 %363  ;;  %621 = vmatpush.bf16.msra.mxu2 %v835_v20 }
  0xcf   :  { %v886_v27 = vpop.eup %885  ;;  %v377_v40 = vmul.f32 %v884_v25, %v344_v33 }
  0xd0   :  { %v888_v36 = vpop.eup %887  ;;  %v374_v44 = vmul.f32 %v886_v27, %v329_v6  ;;  %v390_v37 = vrot.slane %v389_v29, 4  ;;  %v405_v6 = vadd.f32 %v404_v59, %v403_v43  ;;  %v386_v21 = vadd.f32 %v385_v12, %v384_v0  ;;  %v866_v12 = vld [vmem:[%s1199_s7] ss:$0 sm:$0xff] }
  0xd1   :  { %v248_v41 = vpop.f32.mrf.mxu3  ;;  %v378_v52 = vmul.f32 %v888_v36, %v349_v48  ;;  %v417_v55 = vadd.f32 %v377_v40, %v376_v34 }
  0xd2   :  { %v890_v42 = vpop.eup %889  ;;  %v225_v47 = vpop.f32.mrf.mxu0  ;;  %v410_v53 = vadd.f32 %v375_v35, %v374_v44  ;;  %v249_v57 = vadd.f32 %v1156_v45, %v248_v41  ;;  %v391_v60 = vadd.f32 %v390_v37, %v389_v29  ;;  %v406_v16 = vrot.slane %v405_v6, 2  ;;  %622 = vmatpush.bf16.msra.mxu2 %v834_v32 }
  0xd3   :  { %v379_v49 = vmul.f32 %v890_v42, %v354_v46  ;;  %v226_v51 = vadd.f32 %v1156_v45, %v225_v47  ;;  %v892_v63 = vpop.eup %891  ;;  %v418_v1 = vrot.slane %v417_v55, 4  ;;  %v387_v33 = vrot.slane %v386_v21, 1  ;;  %v833_v46 = vld [vmem:[#allocation6 + $0x10] sm:$0xff] }
  0xd4   :  { %v411_v61 = vrot.slane %v410_v53, 4  ;;  %v392_v7 = vrot.slane %v391_v60, 2  ;;  %v370_v9 = vmul.f32 %v892_v63, %v1151_v38  ;;  %v359_v38 = vpop.permute.xlu2 %358  ;;  %v407_v26 = vadd.f32 %v406_v16, %v405_v6  ;;  %v865_v6 = vld [vmem:[%s1197_s5] ss:$0 sm:$0xff]  ;;  %s986_s5 = smov [#allocation8]  }
  0xd5   :  { %893 = vtanh.f32 %v226_v51  ;;  %v424_v56 = vadd.f32 %v379_v49, %v378_v52  ;;  %v419_v13 = vadd.f32 %v418_v1, %v417_v55  ;;  %v388_v47 = vadd.f32 %v387_v33, %v386_v21  ;;  %s662_s4 = sshll.u32 %s986_s5, 4  ;;  %s663_s4 = int_to_ptr.vmem [resolvable:$true] %s662_s4 }
  0xd6   :  { %895 = vtanh.f32 %v249_v57  ;;  %v412_v8 = vadd.f32 %v411_v61, %v410_v53  ;;  %v393_v17 = vadd.f32 %v392_v7, %v391_v60  ;;  %v408_v41 = vrot.slane %v407_v26, 1  ;;  %623 = vmatpush.bf16.msra.mxu2 %v833_v46  ;;  %v832_v57 = vld [vmem:[#allocation6 + $0x8] sm:$0xff] }
  0xd7   :  { %v425_v3 = vrot.slane %v424_v56, 4  ;;  %v420_v22 = vrot.slane %v419_v13, 2 }
  0xd8   :  { %v413_v19 = vrot.slane %v412_v8, 2  ;;  %v394_v27 = vrot.slane %v393_v17, 1  ;;  %v409_v52 = vadd.f32 %v408_v41, %v407_v26 }
  0xd9   :  { %v250_v2 = vpop.f32.mrf.mxu3  ;;  %v426_v14 = vadd.f32 %v425_v3, %v424_v56  ;;  %v421_v35 = vadd.f32 %v420_v22, %v419_v13  ;;  %v633_v13 = vand.u32 127, %v632_v11 }
  0xda   :  { %v251_v4 = vadd.f32 %v1156_v45, %v250_v2  ;;  %v414_v30 = vadd.f32 %v413_v19, %v412_v8  ;;  %v395_v42 = vadd.f32 %v394_v27, %v393_v17  ;;  %624 = vmatpush.bf16.msra.mxu2 %v832_v57 }
  0xdb   :  { %v894_v5 = vpop.eup %893  ;;  %v422_v37 = vrot.slane %v421_v35, 1  ;;  %vm634_vm7 = vcmp.lt.s32.totalorder %v633_v13, 4 }
  0xdc   :  { %v371_v10 = vmul.f32 %v894_v5, %v1158_v50  ;;  %897 = vtanh.f32 %v251_v4  ;;  %v896_v18 = vpop.eup %895  ;;  %v427_v50 = vrot.slane %v426_v14, 2  ;;  %v415_v34 = vrot.slane %v414_v30, 1  ;;  %v831_v5 = vld [vmem:[#allocation6] sm:$0xff] }
  0xdd   :  { %v380_v28 = vmul.f32 %v896_v18, %v359_v38  ;;  %v447_v54 = vsel %vm446_vm0, %v395_v42, %v388_v47  ;;  %v423_v58 = vadd.f32 %v422_v37, %v421_v35 }
  0xde   :  { %v396_v15 = vadd.f32 %v371_v10, %v370_v9  ;;  %v428_v40 = vadd.f32 %v427_v50, %v426_v14  ;;  %v416_v55 = vadd.f32 %v415_v34, %v414_v30  ;;  %625 = vmatpush.bf16.msra.mxu2 %v831_v5  ;;  %v649_v14 = vpop.permute.xlu2 %648 }
  0xdf   :  { %vm650_vm8 = vcmp.eq.s32.totalorder %v633_v13, %v649_v14 }
  0xe0   :  { %v397_v45 = vrot.slane %v396_v15, 4  ;;  %v429_v51 = vrot.slane %v428_v40, 1 }
  0xe2   :  { %v898_v23 = vpop.eup %897  ;;  %v398_v25 = vadd.f32 %v397_v45, %v396_v15  ;;  %v430_v61 = vadd.f32 %v429_v51, %v428_v40 }
  0xe3   :  { %v381_v29 = vmul.f32 %v898_v23, %v364_v24 }
  0xe4   :  { %v399_v31 = vrot.slane %v398_v25, 2 }
  0xe5   :  { %v431_v36 = vadd.f32 %v381_v29, %v380_v28 }
  0xe6   :  { %v400_v39 = vadd.f32 %v399_v31, %v398_v25 }
  0xe7   :  { %v432_v43 = vrot.slane %v431_v36, 4 }
  0xe8   :  { %v401_v44 = vrot.slane %v400_v39, 1 }
  0xe9   :  { %v433_v48 = vadd.f32 %v432_v43, %v431_v36 }
  0xea   :  { %v402_v49 = vadd.f32 %v401_v44, %v400_v39 }
  0xeb   :  { %v434_v53 = vrot.slane %v433_v48, 2 }
  0xec   :  { %v449_v56 = vsel %vm448_vm1, %v402_v49, %v447_v54 }
  0xed   :  { %v435_v59 = vadd.f32 %v434_v53, %v433_v48  ;;  %v451_v60 = vsel %vm450_vm2, %v409_v52, %v449_v56 }
  0xee   :  { %v453_v62 = vsel %vm452_vm3, %v416_v55, %v451_v60 }
  0xef   :  { %v436_v63 = vrot.slane %v435_v59, 1  ;;  %v455_v0 = vsel %vm454_vm4, %v423_v58, %v453_v62 }
  0xf0   :  { %v457_v1 = vsel %vm456_vm5, %v430_v61, %v455_v0 }
  0xf1   :  { %v437_v2 = vadd.f32 %v436_v63, %v435_v59 }
  0xf3   :  { %v459_v3 = vsel %vm458_vm6, %v437_v2, %v457_v1 }
  0xf4   :  { %v467_v4 = vpack.c.bf16 %v459_v3, %v459_v3 }
  0xf6   :  { %544 = vmatmul.bf16.vlgmr.msrb.gmra.mxu1 %v467_v4 }
 0x173   :  { %v545_v7 = vpop.f32.mrf.mxu1 }
 0x174   :  { %v546_v8 = vadd.f32 %v865_v6, %v545_v7 }
 0x176   :  { %v549_v9 = vpack.c.bf16 %v546_v8, %v546_v8 }
 0x178   :  { %626 = vmatmul.bf16.vlgmr.msra.gmra.mxu2 %v549_v9 }
 0x17b   :  { %v547_v10 = vpop.f32.mrf.mxu1 }
 0x1fb   :  { %v627_v15 = vpop.f32.mrf.mxu2 }
 0x1fc   :  { %v628_v16 = vadd.f32 %v866_v12, %v627_v15 }
 0x1fe   :  { %631 = vst [vmem:[#allocation8] sm:$0xff] %v628_v16  ;;  %v651_v17 = vsel %vm650_vm8, %v628_v16, 0.0  ;;  %v635_v18 = vsel %vm634_vm7, %v628_v16, -1e+30 }
 0x1ff   :  { %652 = vadd.xlane.f32.xlu2 %v651_v17  ;;  %636 = vmax.xlane.f32.xlu1 %v635_v18  ;;  %667 = dma.vmem_to_hbm [thread:$0]  %s663_s4, 128, %s665_s6, [#allocation5]  }
 0x203   :  { %v629_v19 = vpop.f32.mrf.mxu2 }
 0x272   :  { %v637_v45 = vpop.xlane.xlu1 %636  ;;  %v653_v25 = vpop.xlane.xlu2 %652 }
 0x273   :  { %v638_v20 = vsub.f32 %v635_v18, %v637_v45 }
 0x275   :  { %v639_v21 = vmul.f32 1.442695, %v638_v20 }
 0x277   :  { %899 = vpow2.f32 %v639_v21 }
 0x27d   :  { %v900_v22 = vpop.eup %899 }
 0x27e   :  { %641 = vadd.xlane.f32.xlu0 %v900_v22 }
 0x2f1   :  { %v642_v23 = vpop.xlane.xlu0 %641 }
 0x2f2   :  { %901 = vlog2.f32 %v642_v23 }
 0x2f8   :  { %v902_v38 = vpop.eup %901 }
 0x2f9   :  { %v644_v24 = vmul.f32 0.6931472, %v902_v38 }
 0x2fb   :  { %v645_v50 = vadd.f32 %v644_v24, %v637_v45 }
 0x2fd   :  { %v654_v26 = vsub.f32 %v645_v50, %v653_v25 }
 0x2ff   :  { %656 = vst.msk [vmem:[%s1202_s10] sm:$0xff] %vm655_vm9, %v654_v26 }
 0x300   :  { %979 = dma.done.wait [#allocation5], 128  }
 0x301   :  { %980 = vsyncadd [#allocation5], 4294967168 }
 0x302   :  { %676 = vsyncpa [#allocation4], 1 }
 0x303   :  { %677 = vsyncpa [#allocation7], 1 }
 0x304   :  { %678 = vsyncpa [#allocation5], 1 }

</bundles_post_ra>
